<compile_context>
chip_gen: v5e
topology: v5e:2x2
jax: 0.10.0
libtpu: 0.0.40
codegen_flags: <defaults>
</compile_context>

<pallas_src>
import functools

import jax
import jax.numpy as jnp
from jax import lax
from jax.experimental import pallas as pl
from jax.experimental.pallas import tpu as pltpu


def _sigmoid(z):
    # Explicit form (EUP exp) — avoids any doubt about `logistic` lowering.
    return 1.0 / (1.0 + jnp.exp(-z))


def _gru_kernel(x2d_ref, h0_ref, wxcat_ref, bcat_ref, whru_ref, whh_ref,
                states_ref, xw_scr, *, T, B, HP):
    """Whole-sequence GRU in one invocation.

    x2d_ref:    (T*B, D)      flattened inputs
    h0_ref:     (B, HP)       zero-padded initial state
    wxcat_ref:  (D, 3*HP)     [Wxr | Wxu | Wxh], zero-padded to HP lanes
    bcat_ref:   (1, 3*HP)     [br  | bu  | bh ]
    whru_ref:   (HP, 2*HP)    [Whr | Whu]
    whh_ref:    (HP, HP)      Whh
    states_ref: (T*B, HP)     per-timestep hidden states (lane-dense)
    xw_scr:     VMEM (T*B, 3*HP) precomputed input projections
    """
    # ---- Phase 1: batched input projection (no sequential dependency) ----
    xw_scr[...] = (
        jnp.dot(x2d_ref[...], wxcat_ref[...], preferred_element_type=jnp.float32)
        + bcat_ref[...]
    )

    # Hoist weight loads out of the loop.
    whru = whru_ref[...]
    whh = whh_ref[...]

    # ---- Phase 2: sequential recurrence (unrolled for LLO visibility) ----
    def step(t, h):
        row = pl.multiple_of(t * B, B)
        xp = xw_scr[pl.ds(row, B), :]            # (B, 3*HP)
        xr = xp[:, 0:HP]
        xu = xp[:, HP:2 * HP]
        xh = xp[:, 2 * HP:3 * HP]

        ru = jnp.dot(h, whru, preferred_element_type=jnp.float32)  # (B, 2*HP)
        r = _sigmoid(xr + ru[:, 0:HP])
        u = _sigmoid(xu + ru[:, HP:2 * HP])
        c = jnp.tanh(
            xh + jnp.dot(r * h, whh, preferred_element_type=jnp.float32)
        )
        h_new = u * h + (1.0 - u) * c
        states_ref[pl.ds(row, B), :] = h_new
        return h_new

    lax.fori_loop(0, T, step, h0_ref[...], unroll=True)


def my_gru_forward(x, initial_state, params):
    """Pallas implementation of MyGRU.forward.

    x:             (T, B, D) float32
    initial_state: (B, H) float32 or None
    params:        dict of the nine MyGRU parameters
    returns:       (states (T, B, H), final_state (B, H))
    """
    wxr, whr, br = params["weight_xr"], params["weight_hr"], params["bias_r"]
    wxu, whu, bu = params["weight_xu"], params["weight_hu"], params["bias_u"]
    wxh, whh, bh = params["weight_xh"], params["weight_hh"], params["bias_h"]

    T, B, D = x.shape
    H = wxr.shape[1]
    HP = ((H + 127) // 128) * 128      # lane-dense hidden width
    TB = T * B

    if initial_state is None:
        initial_state = jnp.zeros((B, H), dtype=x.dtype)

    def pad_cols(a):                    # (..., H) -> (..., HP)
        return jnp.pad(a, [(0, 0), (0, HP - H)])

    def pad_rows_cols(a):               # (H, H) -> (HP, HP)
        return jnp.pad(a, [(0, HP - H), (0, HP - H)])

    wxcat = jnp.concatenate([pad_cols(wxr), pad_cols(wxu), pad_cols(wxh)], axis=1)
    bcat = jnp.concatenate([pad_cols(br), pad_cols(bu), pad_cols(bh)], axis=1)
    whru = jnp.concatenate([pad_rows_cols(whr), pad_rows_cols(whu)], axis=1)
    whh_p = pad_rows_cols(whh)
    h0p = pad_cols(initial_state.astype(jnp.float32))
    x2d = x.reshape(TB, D).astype(jnp.float32)

    kernel = functools.partial(_gru_kernel, T=T, B=B, HP=HP)

    states_flat = pl.pallas_call(
        kernel,
        out_shape=jax.ShapeDtypeStruct((TB, HP), jnp.float32),
        grid_spec=pltpu.PrefetchScalarGridSpec(
            num_scalar_prefetch=0,
            grid=(1,),
            in_specs=[
                pl.BlockSpec((TB, D), lambda i: (0, 0)),        # x flattened
                pl.BlockSpec((B, HP), lambda i: (0, 0)),        # h0 (padded)
                pl.BlockSpec((D, 3 * HP), lambda i: (0, 0)),    # [Wxr|Wxu|Wxh]
                pl.BlockSpec((1, 3 * HP), lambda i: (0, 0)),    # [br|bu|bh]
                pl.BlockSpec((HP, 2 * HP), lambda i: (0, 0)),   # [Whr|Whu]
                pl.BlockSpec((HP, HP), lambda i: (0, 0)),       # Whh
            ],
            out_specs=pl.BlockSpec((TB, HP), lambda i: (0, 0)),
            scratch_shapes=[pltpu.VMEM((TB, 3 * HP), jnp.float32)],
        ),
        compiler_params=pltpu.CompilerParams(
            dimension_semantics=("arbitrary",),
        ),
    )(x2d, h0p, wxcat, bcat, whru, whh_p)

    states = states_flat[:, :H].reshape(T, B, H)
    final_state = states[-1]
    return states, final_state


def reference_forward(x, initial_state, params):
    """Pure-JAX reference matching the PyTorch MyGRU loop exactly."""
    T, B, D = x.shape
    H = params["weight_xr"].shape[1]
    state = (initial_state if initial_state is not None
             else jnp.zeros((B, H), dtype=x.dtype))
    outs = []
    for t in range(T):
        xt = x[t]
        r = _sigmoid(xt @ params["weight_xr"] + state @ params["weight_hr"]
                     + params["bias_r"])
        u = _sigmoid(xt @ params["weight_xu"] + state @ params["weight_hu"]
                     + params["bias_u"])
        c = jnp.tanh(xt @ params["weight_xh"]
                     + (r * state) @ params["weight_hh"] + params["bias_h"])
        state = u * state + (1.0 - u) * c
        outs.append(state)
    return jnp.stack(outs), state


if __name__ == "__main__":
    # Small shapes consistent with MyGRU: seq=8, batch=8, input_size=16, hidden=32
    T, B, D, H = 8, 8, 16, 32

    key = jax.random.PRNGKey(0)
    keys = jax.random.split(key, 8)

    # Deterministic init mirroring torch.normal(mean=0, std=0.01, ...) / zeros biases.
    params = {
        "weight_xr": 0.01 * jax.random.normal(keys[0], (D, H), jnp.float32),
        "weight_hr": 0.01 * jax.random.normal(keys[1], (H, H), jnp.float32),
        "bias_r": jnp.zeros((1, H), jnp.float32),
        "weight_xu": 0.01 * jax.random.normal(keys[2], (D, H), jnp.float32),
        "weight_hu": 0.01 * jax.random.normal(keys[3], (H, H), jnp.float32),
        "bias_u": jnp.zeros((1, H), jnp.float32),
        "weight_xh": 0.01 * jax.random.normal(keys[4], (D, H), jnp.float32),
        "weight_hh": 0.01 * jax.random.normal(keys[5], (H, H), jnp.float32),
        "bias_h": jnp.zeros((1, H), jnp.float32),
    }
    x = jax.random.normal(keys[6], (T, B, D), jnp.float32)
    h0 = jax.random.normal(keys[7], (B, H), jnp.float32)

    states, final_state = my_gru_forward(x, h0, params)
    states = jax.block_until_ready(states)
    final_state = jax.block_until_ready(final_state)

    ref_states, ref_final = reference_forward(x, h0, params)
    assert states.shape == (T, B, H)
    assert final_state.shape == (B, H)
    assert jnp.allclose(states, ref_states, atol=1e-5, rtol=1e-5)
    assert jnp.allclose(final_state, ref_final, atol=1e-5, rtol=1e-5)

    # Also exercise the initial_state=None path.
    states2, final2 = my_gru_forward(x, None, params)
    ref_states2, ref_final2 = reference_forward(x, None, params)
    jax.block_until_ready(states2)
    assert jnp.allclose(states2, ref_states2, atol=1e-5, rtol=1e-5)
    assert jnp.allclose(final2, ref_final2, atol=1e-5, rtol=1e-5)

    print("KERNEL_OK")
</pallas_src>

<mosaic_0001>
module attributes {stable_mosaic.version = 11 : i64} {
  func.func @_gru_kernel(%arg0: i32, %arg1: memref<64x16xf32, #tpu.memory_space<vmem>>, %arg2: memref<8x128xf32, #tpu.memory_space<vmem>>, %arg3: memref<16x384xf32, #tpu.memory_space<vmem>>, %arg4: memref<1x384xf32, #tpu.memory_space<vmem>>, %arg5: memref<128x256xf32, #tpu.memory_space<vmem>>, %arg6: memref<128x128xf32, #tpu.memory_space<vmem>>, %arg7: memref<64x128xf32, #tpu.memory_space<vmem>>, %arg8: memref<64x384xf32, #tpu.memory_space<vmem>>) attributes {dimension_semantics = [#tpu.dimension_semantics<arbitrary>], iteration_bounds = array<i64: 1>, scalar_prefetch = 0 : i64, scratch_operands = 1 : i64, tpu.core_type = #tpu.core_type<tc>, window_params = [{pipeline_mode = #tpu.pipeline_mode<synchronous>, transform_indices = @transform_0, window_bounds = array<i64: 64, 16>}, {pipeline_mode = #tpu.pipeline_mode<synchronous>, transform_indices = @transform_1, window_bounds = array<i64: 8, 128>}, {pipeline_mode = #tpu.pipeline_mode<synchronous>, transform_indices = @transform_2, window_bounds = array<i64: 16, 384>}, {pipeline_mode = #tpu.pipeline_mode<synchronous>, transform_indices = @transform_3, window_bounds = array<i64: 1, 384>}, {pipeline_mode = #tpu.pipeline_mode<synchronous>, transform_indices = @transform_4, window_bounds = array<i64: 128, 256>}, {pipeline_mode = #tpu.pipeline_mode<synchronous>, transform_indices = @transform_5, window_bounds = array<i64: 128, 128>}, {pipeline_mode = #tpu.pipeline_mode<synchronous>, transform_indices = @transform_6, window_bounds = array<i64: 64, 128>}]} {
    %c0 = arith.constant 0 : index
    %c0_0 = arith.constant 0 : index
    %0 = vector.load %arg1[%c0, %c0_0] : memref<64x16xf32, #tpu.memory_space<vmem>>, vector<64x16xf32>
    %c0_1 = arith.constant 0 : index
    %c0_2 = arith.constant 0 : index
    %1 = vector.load %arg3[%c0_1, %c0_2] : memref<16x384xf32, #tpu.memory_space<vmem>>, vector<16x384xf32>
    %cst = arith.constant dense<0.000000e+00> : vector<64x384xf32>
    %2 = tpu.matmul %0, %1, %cst {dimension_numbers = #tpu.dot_dimension_numbers<[1], [0], [0], [1], [0, 0, 1, 1], [], []>} : vector<64x16xf32>, vector<16x384xf32>, vector<64x384xf32> -> vector<64x384xf32>
    %c0_3 = arith.constant 0 : index
    %c0_4 = arith.constant 0 : index
    %3 = vector.load %arg4[%c0_3, %c0_4] : memref<1x384xf32, #tpu.memory_space<vmem>>, vector<1x384xf32>
    %4 = vector.broadcast %3 : vector<1x384xf32> to vector<64x384xf32>
    %5 = arith.addf %2, %4 : vector<64x384xf32>
    %c0_5 = arith.constant 0 : index
    %c0_6 = arith.constant 0 : index
    %6 = vector.load %arg8[%c0_5, %c0_6] : memref<64x384xf32, #tpu.memory_space<vmem>>, vector<64x384xf32>
    tpu.vector_store %arg8[%c0_5, %c0_6], %5 {strides = array<i32>} : memref<64x384xf32, #tpu.memory_space<vmem>>, vector<64x384xf32>,
    %c0_7 = arith.constant 0 : index
    %c0_8 = arith.constant 0 : index
    %7 = vector.load %arg5[%c0_7, %c0_8] : memref<128x256xf32, #tpu.memory_space<vmem>>, vector<128x256xf32>
    %c0_9 = arith.constant 0 : index
    %c0_10 = arith.constant 0 : index
    %8 = vector.load %arg6[%c0_9, %c0_10] : memref<128x128xf32, #tpu.memory_space<vmem>>, vector<128x128xf32>
    %c0_11 = arith.constant 0 : index
    %c0_12 = arith.constant 0 : index
    %9 = vector.load %arg2[%c0_11, %c0_12] : memref<8x128xf32, #tpu.memory_space<vmem>>, vector<8x128xf32>
    %c0_i32 = arith.constant 0 : i32
    %c8_i32 = arith.constant 8 : i32
    %10 = arith.muli %c0_i32, %c8_i32 : i32
    %11 = tpu.assume_multiple %10, 8 : i32
    %12 = arith.index_cast %11 : i32 to index
    %c0_13 = arith.constant 0 : index
    %13 = vector.load %arg8[%12, %c0_13] : memref<64x384xf32, #tpu.memory_space<vmem>>, vector<8x384xf32>
    %14 = vector.extract_strided_slice %13 {offsets = [0, 0], sizes = [8, 128], strides = [1, 1]} : vector<8x384xf32> to vector<8x128xf32>
    %15 = vector.extract_strided_slice %13 {offsets = [0, 128], sizes = [8, 128], strides = [1, 1]} : vector<8x384xf32> to vector<8x128xf32>
    %16 = vector.extract_strided_slice %13 {offsets = [0, 256], sizes = [8, 128], strides = [1, 1]} : vector<8x384xf32> to vector<8x128xf32>
    %cst_14 = arith.constant dense<0.000000e+00> : vector<8x256xf32>
    %17 = tpu.matmul %9, %7, %cst_14 {dimension_numbers = #tpu.dot_dimension_numbers<[1], [0], [0], [1], [0, 0, 1, 1], [], []>} : vector<8x128xf32>, vector<128x256xf32>, vector<8x256xf32> -> vector<8x256xf32>
    %18 = vector.extract_strided_slice %17 {offsets = [0, 0], sizes = [8, 128], strides = [1, 1]} : vector<8x256xf32> to vector<8x128xf32>
    %19 = arith.addf %14, %18 : vector<8x128xf32>
    %cst_15 = arith.constant 0.000000e+00 : f32
    %20 = vector.broadcast %cst_15 : f32 to vector<8x128xf32>
    %21 = arith.subf %20, %19 : vector<8x128xf32>
    %22 = math.exp %21 : vector<8x128xf32>
    %cst_16 = arith.constant 1.000000e+00 : f32
    %23 = vector.broadcast %cst_16 : f32 to vector<8x128xf32>
    %24 = arith.addf %23, %22 : vector<8x128xf32>
    %cst_17 = arith.constant 1.000000e+00 : f32
    %25 = vector.broadcast %cst_17 : f32 to vector<8x128xf32>
    %26 = arith.divf %25, %24 : vector<8x128xf32>
    %27 = vector.extract_strided_slice %17 {offsets = [0, 128], sizes = [8, 128], strides = [1, 1]} : vector<8x256xf32> to vector<8x128xf32>
    %28 = arith.addf %15, %27 : vector<8x128xf32>
    %cst_18 = arith.constant 0.000000e+00 : f32
    %29 = vector.broadcast %cst_18 : f32 to vector<8x128xf32>
    %30 = arith.subf %29, %28 : vector<8x128xf32>
    %31 = math.exp %30 : vector<8x128xf32>
    %cst_19 = arith.constant 1.000000e+00 : f32
    %32 = vector.broadcast %cst_19 : f32 to vector<8x128xf32>
    %33 = arith.addf %32, %31 : vector<8x128xf32>
    %cst_20 = arith.constant 1.000000e+00 : f32
    %34 = vector.broadcast %cst_20 : f32 to vector<8x128xf32>
    %35 = arith.divf %34, %33 : vector<8x128xf32>
    %36 = arith.mulf %26, %9 : vector<8x128xf32>
    %cst_21 = arith.constant dense<0.000000e+00> : vector<8x128xf32>
    %37 = tpu.matmul %36, %8, %cst_21 {dimension_numbers = #tpu.dot_dimension_numbers<[1], [0], [0], [1], [0, 0, 1, 1], [], []>} : vector<8x128xf32>, vector<128x128xf32>, vector<8x128xf32> -> vector<8x128xf32>
    %38 = arith.addf %16, %37 : vector<8x128xf32>
    %39 = math.tanh %38 : vector<8x128xf32>
    %40 = arith.mulf %35, %9 : vector<8x128xf32>
    %cst_22 = arith.constant 1.000000e+00 : f32
    %41 = vector.broadcast %cst_22 : f32 to vector<8x128xf32>
    %42 = arith.subf %41, %35 : vector<8x128xf32>
    %43 = arith.mulf %42, %39 : vector<8x128xf32>
    %44 = arith.addf %40, %43 : vector<8x128xf32>
    %45 = arith.index_cast %11 : i32 to index
    %c0_23 = arith.constant 0 : index
    %46 = vector.load %arg7[%45, %c0_23] : memref<64x128xf32, #tpu.memory_space<vmem>>, vector<8x128xf32>
    tpu.vector_store %arg7[%45, %c0_23], %44 {strides = array<i32>} : memref<64x128xf32, #tpu.memory_space<vmem>>, vector<8x128xf32>,
    %c1_i32 = arith.constant 1 : i32
    %c8_i32_24 = arith.constant 8 : i32
    %47 = arith.muli %c1_i32, %c8_i32_24 : i32
    %48 = tpu.assume_multiple %47, 8 : i32
    %49 = arith.index_cast %48 : i32 to index
    %c0_25 = arith.constant 0 : index
    %50 = vector.load %arg8[%49, %c0_25] : memref<64x384xf32, #tpu.memory_space<vmem>>, vector<8x384xf32>
    %51 = vector.extract_strided_slice %50 {offsets = [0, 0], sizes = [8, 128], strides = [1, 1]} : vector<8x384xf32> to vector<8x128xf32>
    %52 = vector.extract_strided_slice %50 {offsets = [0, 128], sizes = [8, 128], strides = [1, 1]} : vector<8x384xf32> to vector<8x128xf32>
    %53 = vector.extract_strided_slice %50 {offsets = [0, 256], sizes = [8, 128], strides = [1, 1]} : vector<8x384xf32> to vector<8x128xf32>
    %cst_26 = arith.constant dense<0.000000e+00> : vector<8x256xf32>
    %54 = tpu.matmul %44, %7, %cst_26 {dimension_numbers = #tpu.dot_dimension_numbers<[1], [0], [0], [1], [0, 0, 1, 1], [], []>} : vector<8x128xf32>, vector<128x256xf32>, vector<8x256xf32> -> vector<8x256xf32>
    %55 = vector.extract_strided_slice %54 {offsets = [0, 0], sizes = [8, 128], strides = [1, 1]} : vector<8x256xf32> to vector<8x128xf32>
    %56 = arith.addf %51, %55 : vector<8x128xf32>
    %cst_27 = arith.constant 0.000000e+00 : f32
    %57 = vector.broadcast %cst_27 : f32 to vector<8x128xf32>
    %58 = arith.subf %57, %56 : vector<8x128xf32>
    %59 = math.exp %58 : vector<8x128xf32>
    %cst_28 = arith.constant 1.000000e+00 : f32
    %60 = vector.broadcast %cst_28 : f32 to vector<8x128xf32>
    %61 = arith.addf %60, %59 : vector<8x128xf32>
    %cst_29 = arith.constant 1.000000e+00 : f32
    %62 = vector.broadcast %cst_29 : f32 to vector<8x128xf32>
    %63 = arith.divf %62, %61 : vector<8x128xf32>
    %64 = vector.extract_strided_slice %54 {offsets = [0, 128], sizes = [8, 128], strides = [1, 1]} : vector<8x256xf32> to vector<8x128xf32>
    %65 = arith.addf %52, %64 : vector<8x128xf32>
    %cst_30 = arith.constant 0.000000e+00 : f32
    %66 = vector.broadcast %cst_30 : f32 to vector<8x128xf32>
    %67 = arith.subf %66, %65 : vector<8x128xf32>
    %68 = math.exp %67 : vector<8x128xf32>
    %cst_31 = arith.constant 1.000000e+00 : f32
    %69 = vector.broadcast %cst_31 : f32 to vector<8x128xf32>
    %70 = arith.addf %69, %68 : vector<8x128xf32>
    %cst_32 = arith.constant 1.000000e+00 : f32
    %71 = vector.broadcast %cst_32 : f32 to vector<8x128xf32>
    %72 = arith.divf %71, %70 : vector<8x128xf32>
    %73 = arith.mulf %63, %44 : vector<8x128xf32>
    %cst_33 = arith.constant dense<0.000000e+00> : vector<8x128xf32>
    %74 = tpu.matmul %73, %8, %cst_33 {dimension_numbers = #tpu.dot_dimension_numbers<[1], [0], [0], [1], [0, 0, 1, 1], [], []>} : vector<8x128xf32>, vector<128x128xf32>, vector<8x128xf32> -> vector<8x128xf32>
    %75 = arith.addf %53, %74 : vector<8x128xf32>
    %76 = math.tanh %75 : vector<8x128xf32>
    %77 = arith.mulf %72, %44 : vector<8x128xf32>
    %cst_34 = arith.constant 1.000000e+00 : f32
    %78 = vector.broadcast %cst_34 : f32 to vector<8x128xf32>
    %79 = arith.subf %78, %72 : vector<8x128xf32>
    %80 = arith.mulf %79, %76 : vector<8x128xf32>
    %81 = arith.addf %77, %80 : vector<8x128xf32>
    %82 = arith.index_cast %48 : i32 to index
    %c0_35 = arith.constant 0 : index
    %83 = vector.load %arg7[%82, %c0_35] : memref<64x128xf32, #tpu.memory_space<vmem>>, vector<8x128xf32>
    tpu.vector_store %arg7[%82, %c0_35], %81 {strides = array<i32>} : memref<64x128xf32, #tpu.memory_space<vmem>>, vector<8x128xf32>,
    %c2_i32 = arith.constant 2 : i32
    %c8_i32_36 = arith.constant 8 : i32
    %84 = arith.muli %c2_i32, %c8_i32_36 : i32
    %85 = tpu.assume_multiple %84, 8 : i32
    %86 = arith.index_cast %85 : i32 to index
    %c0_37 = arith.constant 0 : index
    %87 = vector.load %arg8[%86, %c0_37] : memref<64x384xf32, #tpu.memory_space<vmem>>, vector<8x384xf32>
    %88 = vector.extract_strided_slice %87 {offsets = [0, 0], sizes = [8, 128], strides = [1, 1]} : vector<8x384xf32> to vector<8x128xf32>
    %89 = vector.extract_strided_slice %87 {offsets = [0, 128], sizes = [8, 128], strides = [1, 1]} : vector<8x384xf32> to vector<8x128xf32>
    %90 = vector.extract_strided_slice %87 {offsets = [0, 256], sizes = [8, 128], strides = [1, 1]} : vector<8x384xf32> to vector<8x128xf32>
    %cst_38 = arith.constant dense<0.000000e+00> : vector<8x256xf32>
    %91 = tpu.matmul %81, %7, %cst_38 {dimension_numbers = #tpu.dot_dimension_numbers<[1], [0], [0], [1], [0, 0, 1, 1], [], []>} : vector<8x128xf32>, vector<128x256xf32>, vector<8x256xf32> -> vector<8x256xf32>
    %92 = vector.extract_strided_slice %91 {offsets = [0, 0], sizes = [8, 128], strides = [1, 1]} : vector<8x256xf32> to vector<8x128xf32>
    %93 = arith.addf %88, %92 : vector<8x128xf32>
    %cst_39 = arith.constant 0.000000e+00 : f32
    %94 = vector.broadcast %cst_39 : f32 to vector<8x128xf32>
    %95 = arith.subf %94, %93 : vector<8x128xf32>
    %96 = math.exp %95 : vector<8x128xf32>
    %cst_40 = arith.constant 1.000000e+00 : f32
    %97 = vector.broadcast %cst_40 : f32 to vector<8x128xf32>
    %98 = arith.addf %97, %96 : vector<8x128xf32>
    %cst_41 = arith.constant 1.000000e+00 : f32
    %99 = vector.broadcast %cst_41 : f32 to vector<8x128xf32>
    %100 = arith.divf %99, %98 : vector<8x128xf32>
    %101 = vector.extract_strided_slice %91 {offsets = [0, 128], sizes = [8, 128], strides = [1, 1]} : vector<8x256xf32> to vector<8x128xf32>
    %102 = arith.addf %89, %101 : vector<8x128xf32>
    %cst_42 = arith.constant 0.000000e+00 : f32
    %103 = vector.broadcast %cst_42 : f32 to vector<8x128xf32>
    %104 = arith.subf %103, %102 : vector<8x128xf32>
    %105 = math.exp %104 : vector<8x128xf32>
    %cst_43 = arith.constant 1.000000e+00 : f32
    %106 = vector.broadcast %cst_43 : f32 to vector<8x128xf32>
    %107 = arith.addf %106, %105 : vector<8x128xf32>
    %cst_44 = arith.constant 1.000000e+00 : f32
    %108 = vector.broadcast %cst_44 : f32 to vector<8x128xf32>
    %109 = arith.divf %108, %107 : vector<8x128xf32>
    %110 = arith.mulf %100, %81 : vector<8x128xf32>
    %cst_45 = arith.constant dense<0.000000e+00> : vector<8x128xf32>
    %111 = tpu.matmul %110, %8, %cst_45 {dimension_numbers = #tpu.dot_dimension_numbers<[1], [0], [0], [1], [0, 0, 1, 1], [], []>} : vector<8x128xf32>, vector<128x128xf32>, vector<8x128xf32> -> vector<8x128xf32>
    %112 = arith.addf %90, %111 : vector<8x128xf32>
    %113 = math.tanh %112 : vector<8x128xf32>
    %114 = arith.mulf %109, %81 : vector<8x128xf32>
    %cst_46 = arith.constant 1.000000e+00 : f32
    %115 = vector.broadcast %cst_46 : f32 to vector<8x128xf32>
    %116 = arith.subf %115, %109 : vector<8x128xf32>
    %117 = arith.mulf %116, %113 : vector<8x128xf32>
    %118 = arith.addf %114, %117 : vector<8x128xf32>
    %119 = arith.index_cast %85 : i32 to index
    %c0_47 = arith.constant 0 : index
    %120 = vector.load %arg7[%119, %c0_47] : memref<64x128xf32, #tpu.memory_space<vmem>>, vector<8x128xf32>
    tpu.vector_store %arg7[%119, %c0_47], %118 {strides = array<i32>} : memref<64x128xf32, #tpu.memory_space<vmem>>, vector<8x128xf32>,
    %c3_i32 = arith.constant 3 : i32
    %c8_i32_48 = arith.constant 8 : i32
    %121 = arith.muli %c3_i32, %c8_i32_48 : i32
    %122 = tpu.assume_multiple %121, 8 : i32
    %123 = arith.index_cast %122 : i32 to index
    %c0_49 = arith.constant 0 : index
    %124 = vector.load %arg8[%123, %c0_49] : memref<64x384xf32, #tpu.memory_space<vmem>>, vector<8x384xf32>
    %125 = vector.extract_strided_slice %124 {offsets = [0, 0], sizes = [8, 128], strides = [1, 1]} : vector<8x384xf32> to vector<8x128xf32>
    %126 = vector.extract_strided_slice %124 {offsets = [0, 128], sizes = [8, 128], strides = [1, 1]} : vector<8x384xf32> to vector<8x128xf32>
    %127 = vector.extract_strided_slice %124 {offsets = [0, 256], sizes = [8, 128], strides = [1, 1]} : vector<8x384xf32> to vector<8x128xf32>
    %cst_50 = arith.constant dense<0.000000e+00> : vector<8x256xf32>
    %128 = tpu.matmul %118, %7, %cst_50 {dimension_numbers = #tpu.dot_dimension_numbers<[1], [0], [0], [1], [0, 0, 1, 1], [], []>} : vector<8x128xf32>, vector<128x256xf32>, vector<8x256xf32> -> vector<8x256xf32>
    %129 = vector.extract_strided_slice %128 {offsets = [0, 0], sizes = [8, 128], strides = [1, 1]} : vector<8x256xf32> to vector<8x128xf32>
    %130 = arith.addf %125, %129 : vector<8x128xf32>
    %cst_51 = arith.constant 0.000000e+00 : f32
    %131 = vector.broadcast %cst_51 : f32 to vector<8x128xf32>
    %132 = arith.subf %131, %130 : vector<8x128xf32>
    %133 = math.exp %132 : vector<8x128xf32>
    %cst_52 = arith.constant 1.000000e+00 : f32
    %134 = vector.broadcast %cst_52 : f32 to vector<8x128xf32>
    %135 = arith.addf %134, %133 : vector<8x128xf32>
    %cst_53 = arith.constant 1.000000e+00 : f32
    %136 = vector.broadcast %cst_53 : f32 to vector<8x128xf32>
    %137 = arith.divf %136, %135 : vector<8x128xf32>
    %138 = vector.extract_strided_slice %128 {offsets = [0, 128], sizes = [8, 128], strides = [1, 1]} : vector<8x256xf32> to vector<8x128xf32>
    %139 = arith.addf %126, %138 : vector<8x128xf32>
    %cst_54 = arith.constant 0.000000e+00 : f32
    %140 = vector.broadcast %cst_54 : f32 to vector<8x128xf32>
    %141 = arith.subf %140, %139 : vector<8x128xf32>
    %142 = math.exp %141 : vector<8x128xf32>
    %cst_55 = arith.constant 1.000000e+00 : f32
    %143 = vector.broadcast %cst_55 : f32 to vector<8x128xf32>
    %144 = arith.addf %143, %142 : vector<8x128xf32>
    %cst_56 = arith.constant 1.000000e+00 : f32
    %145 = vector.broadcast %cst_56 : f32 to vector<8x128xf32>
    %146 = arith.divf %145, %144 : vector<8x128xf32>
    %147 = arith.mulf %137, %118 : vector<8x128xf32>
    %cst_57 = arith.constant dense<0.000000e+00> : vector<8x128xf32>
    %148 = tpu.matmul %147, %8, %cst_57 {dimension_numbers = #tpu.dot_dimension_numbers<[1], [0], [0], [1], [0, 0, 1, 1], [], []>} : vector<8x128xf32>, vector<128x128xf32>, vector<8x128xf32> -> vector<8x128xf32>
    %149 = arith.addf %127, %148 : vector<8x128xf32>
    %150 = math.tanh %149 : vector<8x128xf32>
    %151 = arith.mulf %146, %118 : vector<8x128xf32>
    %cst_58 = arith.constant 1.000000e+00 : f32
    %152 = vector.broadcast %cst_58 : f32 to vector<8x128xf32>
    %153 = arith.subf %152, %146 : vector<8x128xf32>
    %154 = arith.mulf %153, %150 : vector<8x128xf32>
    %155 = arith.addf %151, %154 : vector<8x128xf32>
    %156 = arith.index_cast %122 : i32 to index
    %c0_59 = arith.constant 0 : index
    %157 = vector.load %arg7[%156, %c0_59] : memref<64x128xf32, #tpu.memory_space<vmem>>, vector<8x128xf32>
    tpu.vector_store %arg7[%156, %c0_59], %155 {strides = array<i32>} : memref<64x128xf32, #tpu.memory_space<vmem>>, vector<8x128xf32>,
    %c4_i32 = arith.constant 4 : i32
    %c8_i32_60 = arith.constant 8 : i32
    %158 = arith.muli %c4_i32, %c8_i32_60 : i32
    %159 = tpu.assume_multiple %158, 8 : i32
    %160 = arith.index_cast %159 : i32 to index
    %c0_61 = arith.constant 0 : index
    %161 = vector.load %arg8[%160, %c0_61] : memref<64x384xf32, #tpu.memory_space<vmem>>, vector<8x384xf32>
    %162 = vector.extract_strided_slice %161 {offsets = [0, 0], sizes = [8, 128], strides = [1, 1]} : vector<8x384xf32> to vector<8x128xf32>
    %163 = vector.extract_strided_slice %161 {offsets = [0, 128], sizes = [8, 128], strides = [1, 1]} : vector<8x384xf32> to vector<8x128xf32>
    %164 = vector.extract_strided_slice %161 {offsets = [0, 256], sizes = [8, 128], strides = [1, 1]} : vector<8x384xf32> to vector<8x128xf32>
    %cst_62 = arith.constant dense<0.000000e+00> : vector<8x256xf32>
    %165 = tpu.matmul %155, %7, %cst_62 {dimension_numbers = #tpu.dot_dimension_numbers<[1], [0], [0], [1], [0, 0, 1, 1], [], []>} : vector<8x128xf32>, vector<128x256xf32>, vector<8x256xf32> -> vector<8x256xf32>
    %166 = vector.extract_strided_slice %165 {offsets = [0, 0], sizes = [8, 128], strides = [1, 1]} : vector<8x256xf32> to vector<8x128xf32>
    %167 = arith.addf %162, %166 : vector<8x128xf32>
    %cst_63 = arith.constant 0.000000e+00 : f32
    %168 = vector.broadcast %cst_63 : f32 to vector<8x128xf32>
    %169 = arith.subf %168, %167 : vector<8x128xf32>
    %170 = math.exp %169 : vector<8x128xf32>
    %cst_64 = arith.constant 1.000000e+00 : f32
    %171 = vector.broadcast %cst_64 : f32 to vector<8x128xf32>
    %172 = arith.addf %171, %170 : vector<8x128xf32>
    %cst_65 = arith.constant 1.000000e+00 : f32
    %173 = vector.broadcast %cst_65 : f32 to vector<8x128xf32>
    %174 = arith.divf %173, %172 : vector<8x128xf32>
    %175 = vector.extract_strided_slice %165 {offsets = [0, 128], sizes = [8, 128], strides = [1, 1]} : vector<8x256xf32> to vector<8x128xf32>
    %176 = arith.addf %163, %175 : vector<8x128xf32>
    %cst_66 = arith.constant 0.000000e+00 : f32
    %177 = vector.broadcast %cst_66 : f32 to vector<8x128xf32>
    %178 = arith.subf %177, %176 : vector<8x128xf32>
    %179 = math.exp %178 : vector<8x128xf32>
    %cst_67 = arith.constant 1.000000e+00 : f32
    %180 = vector.broadcast %cst_67 : f32 to vector<8x128xf32>
    %181 = arith.addf %180, %179 : vector<8x128xf32>
    %cst_68 = arith.constant 1.000000e+00 : f32
    %182 = vector.broadcast %cst_68 : f32 to vector<8x128xf32>
    %183 = arith.divf %182, %181 : vector<8x128xf32>
    %184 = arith.mulf %174, %155 : vector<8x128xf32>
    %cst_69 = arith.constant dense<0.000000e+00> : vector<8x128xf32>
    %185 = tpu.matmul %184, %8, %cst_69 {dimension_numbers = #tpu.dot_dimension_numbers<[1], [0], [0], [1], [0, 0, 1, 1], [], []>} : vector<8x128xf32>, vector<128x128xf32>, vector<8x128xf32> -> vector<8x128xf32>
    %186 = arith.addf %164, %185 : vector<8x128xf32>
    %187 = math.tanh %186 : vector<8x128xf32>
    %188 = arith.mulf %183, %155 : vector<8x128xf32>
    %cst_70 = arith.constant 1.000000e+00 : f32
    %189 = vector.broadcast %cst_70 : f32 to vector<8x128xf32>
    %190 = arith.subf %189, %183 : vector<8x128xf32>
    %191 = arith.mulf %190, %187 : vector<8x128xf32>
    %192 = arith.addf %188, %191 : vector<8x128xf32>
    %193 = arith.index_cast %159 : i32 to index
    %c0_71 = arith.constant 0 : index
    %194 = vector.load %arg7[%193, %c0_71] : memref<64x128xf32, #tpu.memory_space<vmem>>, vector<8x128xf32>
    tpu.vector_store %arg7[%193, %c0_71], %192 {strides = array<i32>} : memref<64x128xf32, #tpu.memory_space<vmem>>, vector<8x128xf32>,
    %c5_i32 = arith.constant 5 : i32
    %c8_i32_72 = arith.constant 8 : i32
    %195 = arith.muli %c5_i32, %c8_i32_72 : i32
    %196 = tpu.assume_multiple %195, 8 : i32
    %197 = arith.index_cast %196 : i32 to index
    %c0_73 = arith.constant 0 : index
    %198 = vector.load %arg8[%197, %c0_73] : memref<64x384xf32, #tpu.memory_space<vmem>>, vector<8x384xf32>
    %199 = vector.extract_strided_slice %198 {offsets = [0, 0], sizes = [8, 128], strides = [1, 1]} : vector<8x384xf32> to vector<8x128xf32>
    %200 = vector.extract_strided_slice %198 {offsets = [0, 128], sizes = [8, 128], strides = [1, 1]} : vector<8x384xf32> to vector<8x128xf32>
    %201 = vector.extract_strided_slice %198 {offsets = [0, 256], sizes = [8, 128], strides = [1, 1]} : vector<8x384xf32> to vector<8x128xf32>
    %cst_74 = arith.constant dense<0.000000e+00> : vector<8x256xf32>
    %202 = tpu.matmul %192, %7, %cst_74 {dimension_numbers = #tpu.dot_dimension_numbers<[1], [0], [0], [1], [0, 0, 1, 1], [], []>} : vector<8x128xf32>, vector<128x256xf32>, vector<8x256xf32> -> vector<8x256xf32>
    %203 = vector.extract_strided_slice %202 {offsets = [0, 0], sizes = [8, 128], strides = [1, 1]} : vector<8x256xf32> to vector<8x128xf32>
    %204 = arith.addf %199, %203 : vector<8x128xf32>
    %cst_75 = arith.constant 0.000000e+00 : f32
    %205 = vector.broadcast %cst_75 : f32 to vector<8x128xf32>
    %206 = arith.subf %205, %204 : vector<8x128xf32>
    %207 = math.exp %206 : vector<8x128xf32>
    %cst_76 = arith.constant 1.000000e+00 : f32
    %208 = vector.broadcast %cst_76 : f32 to vector<8x128xf32>
    %209 = arith.addf %208, %207 : vector<8x128xf32>
    %cst_77 = arith.constant 1.000000e+00 : f32
    %210 = vector.broadcast %cst_77 : f32 to vector<8x128xf32>
    %211 = arith.divf %210, %209 : vector<8x128xf32>
    %212 = vector.extract_strided_slice %202 {offsets = [0, 128], sizes = [8, 128], strides = [1, 1]} : vector<8x256xf32> to vector<8x128xf32>
    %213 = arith.addf %200, %212 : vector<8x128xf32>
    %cst_78 = arith.constant 0.000000e+00 : f32
    %214 = vector.broadcast %cst_78 : f32 to vector<8x128xf32>
    %215 = arith.subf %214, %213 : vector<8x128xf32>
    %216 = math.exp %215 : vector<8x128xf32>
    %cst_79 = arith.constant 1.000000e+00 : f32
    %217 = vector.broadcast %cst_79 : f32 to vector<8x128xf32>
    %218 = arith.addf %217, %216 : vector<8x128xf32>
    %cst_80 = arith.constant 1.000000e+00 : f32
    %219 = vector.broadcast %cst_80 : f32 to vector<8x128xf32>
    %220 = arith.divf %219, %218 : vector<8x128xf32>
    %221 = arith.mulf %211, %192 : vector<8x128xf32>
    %cst_81 = arith.constant dense<0.000000e+00> : vector<8x128xf32>
    %222 = tpu.matmul %221, %8, %cst_81 {dimension_numbers = #tpu.dot_dimension_numbers<[1], [0], [0], [1], [0, 0, 1, 1], [], []>} : vector<8x128xf32>, vector<128x128xf32>, vector<8x128xf32> -> vector<8x128xf32>
    %223 = arith.addf %201, %222 : vector<8x128xf32>
    %224 = math.tanh %223 : vector<8x128xf32>
    %225 = arith.mulf %220, %192 : vector<8x128xf32>
    %cst_82 = arith.constant 1.000000e+00 : f32
    %226 = vector.broadcast %cst_82 : f32 to vector<8x128xf32>
    %227 = arith.subf %226, %220 : vector<8x128xf32>
    %228 = arith.mulf %227, %224 : vector<8x128xf32>
    %229 = arith.addf %225, %228 : vector<8x128xf32>
    %230 = arith.index_cast %196 : i32 to index
    %c0_83 = arith.constant 0 : index
    %231 = vector.load %arg7[%230, %c0_83] : memref<64x128xf32, #tpu.memory_space<vmem>>, vector<8x128xf32>
    tpu.vector_store %arg7[%230, %c0_83], %229 {strides = array<i32>} : memref<64x128xf32, #tpu.memory_space<vmem>>, vector<8x128xf32>,
    %c6_i32 = arith.constant 6 : i32
    %c8_i32_84 = arith.constant 8 : i32
    %232 = arith.muli %c6_i32, %c8_i32_84 : i32
    %233 = tpu.assume_multiple %232, 8 : i32
    %234 = arith.index_cast %233 : i32 to index
    %c0_85 = arith.constant 0 : index
    %235 = vector.load %arg8[%234, %c0_85] : memref<64x384xf32, #tpu.memory_space<vmem>>, vector<8x384xf32>
    %236 = vector.extract_strided_slice %235 {offsets = [0, 0], sizes = [8, 128], strides = [1, 1]} : vector<8x384xf32> to vector<8x128xf32>
    %237 = vector.extract_strided_slice %235 {offsets = [0, 128], sizes = [8, 128], strides = [1, 1]} : vector<8x384xf32> to vector<8x128xf32>
    %238 = vector.extract_strided_slice %235 {offsets = [0, 256], sizes = [8, 128], strides = [1, 1]} : vector<8x384xf32> to vector<8x128xf32>
    %cst_86 = arith.constant dense<0.000000e+00> : vector<8x256xf32>
    %239 = tpu.matmul %229, %7, %cst_86 {dimension_numbers = #tpu.dot_dimension_numbers<[1], [0], [0], [1], [0, 0, 1, 1], [], []>} : vector<8x128xf32>, vector<128x256xf32>, vector<8x256xf32> -> vector<8x256xf32>
    %240 = vector.extract_strided_slice %239 {offsets = [0, 0], sizes = [8, 128], strides = [1, 1]} : vector<8x256xf32> to vector<8x128xf32>
    %241 = arith.addf %236, %240 : vector<8x128xf32>
    %cst_87 = arith.constant 0.000000e+00 : f32
    %242 = vector.broadcast %cst_87 : f32 to vector<8x128xf32>
    %243 = arith.subf %242, %241 : vector<8x128xf32>
    %244 = math.exp %243 : vector<8x128xf32>
    %cst_88 = arith.constant 1.000000e+00 : f32
    %245 = vector.broadcast %cst_88 : f32 to vector<8x128xf32>
    %246 = arith.addf %245, %244 : vector<8x128xf32>
    %cst_89 = arith.constant 1.000000e+00 : f32
    %247 = vector.broadcast %cst_89 : f32 to vector<8x128xf32>
    %248 = arith.divf %247, %246 : vector<8x128xf32>
    %249 = vector.extract_strided_slice %239 {offsets = [0, 128], sizes = [8, 128], strides = [1, 1]} : vector<8x256xf32> to vector<8x128xf32>
    %250 = arith.addf %237, %249 : vector<8x128xf32>
    %cst_90 = arith.constant 0.000000e+00 : f32
    %251 = vector.broadcast %cst_90 : f32 to vector<8x128xf32>
    %252 = arith.subf %251, %250 : vector<8x128xf32>
    %253 = math.exp %252 : vector<8x128xf32>
    %cst_91 = arith.constant 1.000000e+00 : f32
    %254 = vector.broadcast %cst_91 : f32 to vector<8x128xf32>
    %255 = arith.addf %254, %253 : vector<8x128xf32>
    %cst_92 = arith.constant 1.000000e+00 : f32
    %256 = vector.broadcast %cst_92 : f32 to vector<8x128xf32>
    %257 = arith.divf %256, %255 : vector<8x128xf32>
    %258 = arith.mulf %248, %229 : vector<8x128xf32>
    %cst_93 = arith.constant dense<0.000000e+00> : vector<8x128xf32>
    %259 = tpu.matmul %258, %8, %cst_93 {dimension_numbers = #tpu.dot_dimension_numbers<[1], [0], [0], [1], [0, 0, 1, 1], [], []>} : vector<8x128xf32>, vector<128x128xf32>, vector<8x128xf32> -> vector<8x128xf32>
    %260 = arith.addf %238, %259 : vector<8x128xf32>
    %261 = math.tanh %260 : vector<8x128xf32>
    %262 = arith.mulf %257, %229 : vector<8x128xf32>
    %cst_94 = arith.constant 1.000000e+00 : f32
    %263 = vector.broadcast %cst_94 : f32 to vector<8x128xf32>
    %264 = arith.subf %263, %257 : vector<8x128xf32>
    %265 = arith.mulf %264, %261 : vector<8x128xf32>
    %266 = arith.addf %262, %265 : vector<8x128xf32>
    %267 = arith.index_cast %233 : i32 to index
    %c0_95 = arith.constant 0 : index
    %268 = vector.load %arg7[%267, %c0_95] : memref<64x128xf32, #tpu.memory_space<vmem>>, vector<8x128xf32>
    tpu.vector_store %arg7[%267, %c0_95], %266 {strides = array<i32>} : memref<64x128xf32, #tpu.memory_space<vmem>>, vector<8x128xf32>,
    %c7_i32 = arith.constant 7 : i32
    %c8_i32_96 = arith.constant 8 : i32
    %269 = arith.muli %c7_i32, %c8_i32_96 : i32
    %270 = tpu.assume_multiple %269, 8 : i32
    %271 = arith.index_cast %270 : i32 to index
    %c0_97 = arith.constant 0 : index
    %272 = vector.load %arg8[%271, %c0_97] : memref<64x384xf32, #tpu.memory_space<vmem>>, vector<8x384xf32>
    %273 = vector.extract_strided_slice %272 {offsets = [0, 0], sizes = [8, 128], strides = [1, 1]} : vector<8x384xf32> to vector<8x128xf32>
    %274 = vector.extract_strided_slice %272 {offsets = [0, 128], sizes = [8, 128], strides = [1, 1]} : vector<8x384xf32> to vector<8x128xf32>
    %275 = vector.extract_strided_slice %272 {offsets = [0, 256], sizes = [8, 128], strides = [1, 1]} : vector<8x384xf32> to vector<8x128xf32>
    %cst_98 = arith.constant dense<0.000000e+00> : vector<8x256xf32>
    %276 = tpu.matmul %266, %7, %cst_98 {dimension_numbers = #tpu.dot_dimension_numbers<[1], [0], [0], [1], [0, 0, 1, 1], [], []>} : vector<8x128xf32>, vector<128x256xf32>, vector<8x256xf32> -> vector<8x256xf32>
    %277 = vector.extract_strided_slice %276 {offsets = [0, 0], sizes = [8, 128], strides = [1, 1]} : vector<8x256xf32> to vector<8x128xf32>
    %278 = arith.addf %273, %277 : vector<8x128xf32>
    %cst_99 = arith.constant 0.000000e+00 : f32
    %279 = vector.broadcast %cst_99 : f32 to vector<8x128xf32>
    %280 = arith.subf %279, %278 : vector<8x128xf32>
    %281 = math.exp %280 : vector<8x128xf32>
    %cst_100 = arith.constant 1.000000e+00 : f32
    %282 = vector.broadcast %cst_100 : f32 to vector<8x128xf32>
    %283 = arith.addf %282, %281 : vector<8x128xf32>
    %cst_101 = arith.constant 1.000000e+00 : f32
    %284 = vector.broadcast %cst_101 : f32 to vector<8x128xf32>
    %285 = arith.divf %284, %283 : vector<8x128xf32>
    %286 = vector.extract_strided_slice %276 {offsets = [0, 128], sizes = [8, 128], strides = [1, 1]} : vector<8x256xf32> to vector<8x128xf32>
    %287 = arith.addf %274, %286 : vector<8x128xf32>
    %cst_102 = arith.constant 0.000000e+00 : f32
    %288 = vector.broadcast %cst_102 : f32 to vector<8x128xf32>
    %289 = arith.subf %288, %287 : vector<8x128xf32>
    %290 = math.exp %289 : vector<8x128xf32>
    %cst_103 = arith.constant 1.000000e+00 : f32
    %291 = vector.broadcast %cst_103 : f32 to vector<8x128xf32>
    %292 = arith.addf %291, %290 : vector<8x128xf32>
    %cst_104 = arith.constant 1.000000e+00 : f32
    %293 = vector.broadcast %cst_104 : f32 to vector<8x128xf32>
    %294 = arith.divf %293, %292 : vector<8x128xf32>
    %295 = arith.mulf %285, %266 : vector<8x128xf32>
    %cst_105 = arith.constant dense<0.000000e+00> : vector<8x128xf32>
    %296 = tpu.matmul %295, %8, %cst_105 {dimension_numbers = #tpu.dot_dimension_numbers<[1], [0], [0], [1], [0, 0, 1, 1], [], []>} : vector<8x128xf32>, vector<128x128xf32>, vector<8x128xf32> -> vector<8x128xf32>
    %297 = arith.addf %275, %296 : vector<8x128xf32>
    %298 = math.tanh %297 : vector<8x128xf32>
    %299 = arith.mulf %294, %266 : vector<8x128xf32>
    %cst_106 = arith.constant 1.000000e+00 : f32
    %300 = vector.broadcast %cst_106 : f32 to vector<8x128xf32>
    %301 = arith.subf %300, %294 : vector<8x128xf32>
    %302 = arith.mulf %301, %298 : vector<8x128xf32>
    %303 = arith.addf %299, %302 : vector<8x128xf32>
    %304 = arith.index_cast %270 : i32 to index
    %c0_107 = arith.constant 0 : index
    %305 = vector.load %arg7[%304, %c0_107] : memref<64x128xf32, #tpu.memory_space<vmem>>, vector<8x128xf32>
    tpu.vector_store %arg7[%304, %c0_107], %303 {strides = array<i32>} : memref<64x128xf32, #tpu.memory_space<vmem>>, vector<8x128xf32>,
    %c8_i32_108 = arith.constant 8 : i32
    return
  }
  func.func @transform_0(%arg0: i32) -> (i32, i32) {
    %c0_i32 = arith.constant 0 : i32
    %c0_i32_0 = arith.constant 0 : i32
    %c0_i32_1 = arith.constant 0 : i32
    return %c0_i32, %c0_i32_0 : i32, i32
  }
  func.func @transform_1(%arg0: i32) -> (i32, i32) {
    %c0_i32 = arith.constant 0 : i32
    %c0_i32_0 = arith.constant 0 : i32
    %c0_i32_1 = arith.constant 0 : i32
    return %c0_i32, %c0_i32_0 : i32, i32
  }
  func.func @transform_2(%arg0: i32) -> (i32, i32) {
    %c0_i32 = arith.constant 0 : i32
    %c0_i32_0 = arith.constant 0 : i32
    %c0_i32_1 = arith.constant 0 : i32
    return %c0_i32, %c0_i32_0 : i32, i32
  }
  func.func @transform_3(%arg0: i32) -> (i32, i32) {
    %c0_i32 = arith.constant 0 : i32
    %c0_i32_0 = arith.constant 0 : i32
    %c0_i32_1 = arith.constant 0 : i32
    return %c0_i32, %c0_i32_0 : i32, i32
  }
  func.func @transform_4(%arg0: i32) -> (i32, i32) {
    %c0_i32 = arith.constant 0 : i32
    %c0_i32_0 = arith.constant 0 : i32
    %c0_i32_1 = arith.constant 0 : i32
    return %c0_i32, %c0_i32_0 : i32, i32
  }
  func.func @transform_5(%arg0: i32) -> (i32, i32) {
    %c0_i32 = arith.constant 0 : i32
    %c0_i32_0 = arith.constant 0 : i32
    %c0_i32_1 = arith.constant 0 : i32
    return %c0_i32, %c0_i32_0 : i32, i32
  }
  func.func @transform_6(%arg0: i32) -> (i32, i32) {
    %c0_i32 = arith.constant 0 : i32
    %c0_i32_0 = arith.constant 0 : i32
    %c0_i32_1 = arith.constant 0 : i32
    return %c0_i32, %c0_i32_0 : i32, i32
  }
}

</mosaic_0001>

<bundles_post_ra>
// kernel: tpu_custom_call.1
= control target key start
LH: loop header
LB: loop body
LE: loop exit
PB: predicated region body
PF: predicated region fallthrough
CT: control target
= control target key end

     0   :  { %11 = vsyncpa [#allocation4], 0  ;;  %s2367_s0 = inlined_call_operand.vmem [shape: f32[64,16], index: 0, kind: input, shape index: {}]   ;;  %s2368_s1 = inlined_call_operand.vmem [shape: f32[8,128], index: 1, kind: input, shape index: {}]   ;;  %s2369_s2 = inlined_call_operand.vmem [shape: f32[16,384], index: 2, kind: input, shape index: {}]   ;;  %s2370_s3 = inlined_call_operand.vmem [shape: f32[1,384], index: 3, kind: input, shape index: {}]   ;;  %s2371_s4 = inlined_call_operand.hbm [shape: f32[128,256], index: 4, kind: input, shape index: {}]   ;;  %s2372_s5 = inlined_call_operand.hbm [shape: f32[128,128], index: 5, kind: input, shape index: {}]   ;;  %s2373_s6 = inlined_call_operand.hbm [shape: f32[64,128], index: 6, kind: output, shape index: {}]  }
   0x1   :  { %12 = vsyncpa [#allocation7], 0 }
   0x2   :  { %13 = vsyncpa [#allocation5], 0  ;;  %s26_s23 = sshll.u32 %s2371_s4, 4  ;;  %s1486_s24 = smov [#allocation3]   ;;  %s27_s23 = int_to_ptr.hbm [resolvable:$true] %s26_s23 }
   0x3   :  { %s28_s25 = sshll.u32 %s1486_s24, 4  ;;  %s39_s28 = sshll.u32 %s2372_s5, 4  ;;  %s29_s25 = int_to_ptr.vmem [resolvable:$true] %s28_s25  ;;  %s40_s28 = int_to_ptr.hbm [resolvable:$true] %s39_s28 }
   0x4   :  { %s1487_s29 = smov 256   ;;  %s1488_s30 = smov 16  }
   0x5   :  { %34 = dma.hbm_to_vmem [thread:$0]  %s27_s23, 4096, %s29_s25, [#allocation4], %s1487_s29, %s1487_s29, %s1488_s30  }
   0x6   :  { %s1489_s7 = smov [#allocation6]   ;;  %s1490_s9 = smov 128  }
   0x7   :  { %s41_s8 = sshll.u32 %s1489_s7, 4  ;;  %s1491_s10 = smov 8   ;;  %s42_s8 = int_to_ptr.vmem [resolvable:$true] %s41_s8 }
   0x8   :  { %47 = dma.hbm_to_vmem [thread:$0]  %s40_s28, 2048, %s42_s8, [#allocation7], %s1490_s9, %s1490_s9, %s1491_s10  }
   0x9   :  { %1480 = dma.done.wait [#allocation4], 4096  }
   0xa   :  { %1481 = vsyncadd [#allocation4], 4294963200 }
   0xb   :  { %1482 = dma.done.wait [#allocation7], 2048  }
   0xc   :  { %1483 = vsyncadd [#allocation7], 4294965248  ;;  %v1537_v0 = vld [vmem:[#allocation3 + $0xf0] sm:$0xff]  ;;  %v1539_v1 = vld [vmem:[#allocation3 + $0xe0] sm:$0xff]  ;;  %vm78_vm0 = vcmask 130048   ;;  %s1224_s17 = sshll.u32 %s2373_s6, 4  ;;  %s1225_s17 = int_to_ptr.hbm [resolvable:$true] %s1224_s17 }
   0xd   :  { %305 = vmatpush.msra.mxu3 %v1537_v0  ;;  %v1542_v2 = vld [vmem:[#allocation3 + $0xd0] sm:$0xff]  ;;  %v1545_v3 = vld [vmem:[#allocation3 + $0xc0] sm:$0xff]  ;;  %v67_v4 = vld [vmem:[%s2369_s2 + $0x18] sm:$0xff] }
   0xe   :  { %v1551_v5 = vld [vmem:[#allocation3 + $0xb0] sm:$0xff]  ;;  %117 = vmatpush.msra.mxu0 %v67_v4  ;;  %v64_v6 = vld [vmem:[%s2369_s2] sm:$0xff]  ;;  %1269 = vmatpush.msra.mxu2 %v67_v4  ;;  %v1582_v14 = vld [vmem:[#allocation6 + $0x78] sm:$0xff] }
   0xf   :  { %306 = vmatpush.msra.mxu3 %v1539_v1  ;;  %v1559_v7 = vld [vmem:[%s2367_s0] sm:$0xff]  ;;  %v1567_v9 = vld [vmem:[#allocation3 + $0x90] sm:$0xff]  ;;  %v1600_v20 = vld [vmem:[#allocation6 + $0x68] sm:$0xff] }
  0x10   :  { %v1562_v8 = vld [vmem:[#allocation3 + $0xa0] sm:$0xff]  ;;  %118 = vmatpush.msra.mxu0 %v64_v6  ;;  %1270 = vmatpush.msra.mxu2 %v64_v6  ;;  %v1573_v11 = vld [vmem:[#allocation3 + $0x70] sm:$0xff]  ;;  %v1605_v21 = vld [vmem:[%s2367_s0 + $0x8] sm:$0xff] }
  0x11   :  { %307 = vmatpush.msra.mxu3 %v1542_v2  ;;  %1245 = vmatmul.msk.f32.vlgmr.msra.gmra.mxu0 %vm78_vm0, %v1559_v7  ;;  %v1570_v10 = vld [vmem:[#allocation3 + $0x80] sm:$0xff]  ;;  %v1579_v13 = vld [vmem:[#allocation3 + $0x50] sm:$0xff]  ;;  %v1618_v24 = vld [vmem:[#allocation3 + $0xf8] sm:$0xff] }
  0x12   :  { %v1576_v12 = vld [vmem:[#allocation3 + $0x60] sm:$0xff]  ;;  %386 = vmatpush.msrb.mxu0 %v1582_v14  ;;  %v1588_v16 = vld [vmem:[#allocation3 + $0x30] sm:$0xff]  ;;  %v1621_v25 = vld [vmem:[#allocation3 + $0xe8] sm:$0xff] }
  0x13   :  { %308 = vmatpush.msra.mxu3 %v1545_v3  ;;  %v1584_v15 = vld [vmem:[#allocation3 + $0x40] sm:$0xff]  ;;  %v1591_v17 = vld [vmem:[#allocation6 + $0x70] sm:$0xff]  ;;  %v1630_v28 = vld [vmem:[#allocation6 + $0x58] sm:$0xff] }
  0x14   :  { %v1593_v18 = vld [vmem:[#allocation3 + $0x20] sm:$0xff]  ;;  %387 = vmatpush.msrb.mxu0 %v1591_v17  ;;  %v1597_v19 = vld [vmem:[#allocation3 + $0x10] sm:$0xff]  ;;  %v65_v29 = vld [vmem:[%s2369_s2 + $0x8] sm:$0xff] }
  0x15   :  { %309 = vmatpush.msra.mxu3 %v1551_v5  ;;  %v1607_v22 = vld [vmem:[#allocation3] sm:$0xff]  ;;  %v1636_v30 = vld [vmem:[#allocation6 + $0x50] sm:$0xff]  ;;  %v1638_v31 = vld [vmem:[#allocation3 + $0xd8] sm:$0xff] }
  0x16   :  { %388 = vmatpush.msrb.mxu0 %v1600_v20  ;;  %v1614_v23 = vld [vmem:[%s2368_s1] sm:$0xff]  ;;  %v1644_v32 = vld [vmem:[%s2367_s0 + $0x10] sm:$0xff]  ;;  %v1647_v33 = vld [vmem:[#allocation3 + $0xc8] sm:$0xff] }
  0x17   :  { %310 = vmatpush.msra.mxu3 %v1562_v8  ;;  %v1623_v26 = vld [vmem:[#allocation6 + $0x60] sm:$0xff]  ;;  %v1655_v34 = vld [vmem:[#allocation3 + $0xb8] sm:$0xff]  ;;  %v1659_v35 = vld [vmem:[#allocation3 + $0xa8] sm:$0xff] }
  0x18   :  { %389 = vmatpush.msrb.mxu0 %v1623_v26  ;;  %v68_v27 = vld [vmem:[%s2369_s2 + $0x20] sm:$0xff]  ;;  %v1663_v36 = vld [vmem:[#allocation3 + $0x98] sm:$0xff]  ;;  %v1667_v37 = vld [vmem:[#allocation3 + $0x88] sm:$0xff] }
  0x19   :  { %311 = vmatpush.msra.mxu3 %v1567_v9  ;;  %1246 = vmatmul.msk.f32.gmra.mxu0 %vm78_vm0, %v1605_v21  ;;  %v1673_v38 = vld [vmem:[#allocation3 + $0x78] sm:$0xff]  ;;  %v1677_v39 = vld [vmem:[#allocation3 + $0x68] sm:$0xff]  ;;  %v1747_v47 = vld [vmem:[%s2367_s0 + $0x20] sm:$0xff] }
  0x1a   :  { %158 = vmatpush.msra.mxu1 %v68_v27  ;;  %390 = vmatpush.msrb.mxu0 %v1630_v28  ;;  %2391 = vst [vmem:[#allocation12_spill] sm:$0xff] %v1677_v39  ;;  %v1681_v40 = vld [vmem:[#allocation3 + $0x58] sm:$0xff]  ;;  %v1685_v41 = vld [vmem:[#allocation3 + $0x48] sm:$0xff]  ;;  %v1763_v50 = vld [vmem:[#allocation6 + $0x40] sm:$0xff] }
  0x1b   :  { %312 = vmatpush.msra.mxu3 %v1570_v10  ;;  %1271 = vmatpush.msrb.mxu2 %v68_v27  ;;  %2392 = vst [vmem:[#allocation13_spill] sm:$0xff] %v1681_v40  ;;  %v1691_v42 = vld [vmem:[#allocation3 + $0x38] sm:$0xff]  ;;  %v1695_v43 = vld [vmem:[#allocation3 + $0x28] sm:$0xff]  ;;  %v1778_v54 = vld [vmem:[#allocation6 + $0x30] sm:$0xff] }
  0x1c   :  { %159 = vmatpush.msra.mxu1 %v65_v29  ;;  %391 = vmatpush.msrb.mxu0 %v1636_v30  ;;  %2393 = vst [vmem:[#allocation14_spill] sm:$0xff] %v1685_v41  ;;  %v1699_v44 = vld [vmem:[#allocation3 + $0x18] sm:$0xff]  ;;  %v1703_v45 = vld [vmem:[#allocation3 + $0x8] sm:$0xff]  ;;  %v66_v55 = vld [vmem:[%s2369_s2 + $0x10] sm:$0xff] }
  0x1d   :  { %313 = vmatpush.msra.mxu3 %v1573_v11  ;;  %1253 = vmatmul.msk.f32.vlgmr.msra.gmra.mxu1 %vm78_vm0, %v1559_v7  ;;  %2394 = vst [vmem:[#allocation15_spill] sm:$0xff] %v1691_v42  ;;  %v1738_v46 = vld [vmem:[%s2367_s0 + $0x18] sm:$0xff]  ;;  %v1760_v49 = vld [vmem:[#allocation6 + $0x48] sm:$0xff]  ;;  %v1796_v57 = vld [vmem:[%s2370_s3] sm:$0x7] }
  0x1e   :  { %1272 = vmatpush.msrb.mxu2 %v65_v29  ;;  %419 = vmatpush.msrb.mxu1 %v1537_v0  ;;  %2395 = vst [vmem:[#allocation16_spill] sm:$0xff] %v1695_v43  ;;  %v1752_v48 = vld [vmem:[%s2367_s0 + $0x38] sm:$0xff]  ;;  %v1771_v52 = vld [vmem:[%s2367_s0 + $0x28] sm:$0xff]  ;;  %v1799_v58 = vld [vmem:[#allocation6 + $0x20] sm:$0xff]  ;;  %v1810_v60 = vperm.slane %v1796_v57, 0 }
  0x1f   :  { %314 = vmatpush.msra.mxu3 %v1576_v12  ;;  %2396 = vst [vmem:[#allocation17_spill] sm:$0xff] %v1699_v44  ;;  %1252 = vmatmul.msk.f32.vlgmr.msra.gmra.mxu2 %vm78_vm0, %v1752_v48  ;;  %v1766_v51 = vld [vmem:[#allocation6 + $0x38] sm:$0xff]  ;;  %v69_v53 = vld [vmem:[%s2369_s2 + $0x28] sm:$0xff]  ;;  %v1807_v59 = vld [vmem:[%s2367_s0 + $0x30] sm:$0xff]  ;;  %s1492_s0 = smov [#allocation8]  }
  0x20   :  { %420 = vmatpush.msrb.mxu1 %v1539_v1  ;;  %2397 = vst [vmem:[#allocation18_spill] sm:$0xff] %v1703_v45  ;;  %392 = vmatpush.msrb.mxu0 %v1760_v49  ;;  %v1788_v56 = vld [vmem:[#allocation6 + $0x28] sm:$0xff]  ;;  %v1812_v61 = vld [vmem:[#allocation6 + $0x18] sm:$0xff]  ;;  %v1817_v63 = vld [vmem:[#allocation6 + $0x10] sm:$0xff]  ;;  %s1222_s3 = sshll.u32 %s1492_s0, 4  ;;  %s1223_s3 = int_to_ptr.vmem [resolvable:$true] %s1222_s3 }
  0x21   :  { %315 = vmatpush.msra.mxu3 %v1579_v13  ;;  %1247 = vmatmul.msk.f32.gmra.mxu0 %vm78_vm0, %v1644_v32  ;;  %v1826_v6 = vld [vmem:[#allocation6 + $0x8] sm:$0xff]  ;;  %v1833_v27 = vld [vmem:[#allocation6] sm:$0xff] }
  0x22   :  { %421 = vmatpush.msrb.mxu1 %v1542_v2  ;;  %393 = vmatpush.msrb.mxu0 %v1763_v50 }
  0x23   :  { %316 = vmatpush.msra.mxu3 %v1584_v15  ;;  %199 = vmatpush.msra.mxu2 %v69_v53 }
  0x24   :  { %422 = vmatpush.msrb.mxu1 %v1545_v3  ;;  %394 = vmatpush.msrb.mxu0 %v1766_v51 }
  0x25   :  { %317 = vmatpush.msra.mxu3 %v1588_v16  ;;  %1254 = vmatmul.msk.f32.gmra.mxu1 %vm78_vm0, %v1605_v21 }
  0x26   :  { %423 = vmatpush.msrb.mxu1 %v1551_v5  ;;  %395 = vmatpush.msrb.mxu0 %v1778_v54 }
  0x27   :  { %318 = vmatpush.msra.mxu3 %v1593_v18  ;;  %1260 = vmatmul.msk.f32.vlgmr.msrb.gmra.mxu2 %vm78_vm0, %v1752_v48 }
  0x28   :  { %424 = vmatpush.msrb.mxu1 %v1562_v8  ;;  %200 = vmatpush.msra.mxu2 %v66_v55 }
  0x29   :  { %319 = vmatpush.msra.mxu3 %v1597_v19  ;;  %1248 = vmatmul.msk.f32.gmra.mxu0 %vm78_vm0, %v1738_v46 }
  0x2a   :  { %425 = vmatpush.msrb.mxu1 %v1567_v9  ;;  %439 = vmatpush.msrb.mxu2 %v1618_v24 }
  0x2b   :  { %320 = vmatpush.msra.mxu3 %v1607_v22  ;;  %396 = vmatpush.msrb.mxu0 %v1788_v56 }
  0x2c   :  { %321 = vmatmul.f32.vlgmr.msra.gmra.mxu3 %v1614_v23  ;;  %426 = vmatpush.msrb.mxu1 %v1570_v10 }
  0x2d   :  { %325 = vmatpush.msrb.mxu3 %v1618_v24  ;;  %1255 = vmatmul.msk.f32.gmra.mxu1 %vm78_vm0, %v1644_v32 }
  0x2e   :  { %427 = vmatpush.msrb.mxu1 %v1573_v11  ;;  %440 = vmatpush.msrb.mxu2 %v1621_v25 }
  0x2f   :  { %326 = vmatpush.msrb.mxu3 %v1621_v25  ;;  %397 = vmatpush.msrb.mxu0 %v1799_v58 }
  0x30   :  { %428 = vmatpush.msrb.mxu1 %v1576_v12  ;;  %1261 = vmatmul.msk.f32.vlgmr.msra.gmra.mxu2 %vm78_vm0, %v1559_v7 }
  0x31   :  { %327 = vmatpush.msrb.mxu3 %v1638_v31  ;;  %1249 = vmatmul.msk.f32.gmra.mxu0 %vm78_vm0, %v1747_v47 }
  0x32   :  { %429 = vmatpush.msrb.mxu1 %v1579_v13  ;;  %398 = vmatpush.msrb.mxu0 %v1812_v61 }
  0x33   :  { %328 = vmatpush.msrb.mxu3 %v1647_v33  ;;  %441 = vmatpush.msrb.mxu2 %v1638_v31 }
  0x34   :  { %430 = vmatpush.msrb.mxu1 %v1584_v15  ;;  %399 = vmatpush.msrb.mxu0 %v1817_v63 }
  0x35   :  { %329 = vmatpush.msrb.mxu3 %v1655_v34  ;;  %1256 = vmatmul.msk.f32.gmra.mxu1 %vm78_vm0, %v1738_v46 }
  0x36   :  { %431 = vmatpush.msrb.mxu1 %v1588_v16  ;;  %442 = vmatpush.msrb.mxu2 %v1647_v33 }
  0x37   :  { %330 = vmatpush.msrb.mxu3 %v1659_v35  ;;  %400 = vmatpush.msrb.mxu0 %v1826_v6 }
  0x38   :  { %432 = vmatpush.msrb.mxu1 %v1593_v18  ;;  %443 = vmatpush.msrb.mxu2 %v1655_v34 }
  0x39   :  { %331 = vmatpush.msrb.mxu3 %v1663_v36  ;;  %1250 = vmatmul.msk.f32.gmra.mxu0 %vm78_vm0, %v1771_v52 }
  0x3a   :  { %433 = vmatpush.msrb.mxu1 %v1597_v19  ;;  %401 = vmatpush.msrb.mxu0 %v1833_v27 }
  0x3b   :  { %332 = vmatpush.msrb.mxu3 %v1667_v37  ;;  %444 = vmatpush.msrb.mxu2 %v1659_v35 }
  0x3c   :  { %434 = vmatpush.msrb.mxu1 %v1607_v22  ;;  %1262 = vmatmul.msk.f32.gmra.mxu2 %vm78_vm0, %v1605_v21 }
  0x3d   :  { %333 = vmatpush.msrb.mxu3 %v1673_v38  ;;  %1257 = vmatmul.msk.f32.gmra.mxu1 %vm78_vm0, %v1747_v47 }
  0x3e   :  { %554 = vmatpush.msra.mxu1 %v1618_v24  ;;  %445 = vmatpush.msrb.mxu2 %v1663_v36 }
  0x3f   :  { %334 = vmatpush.msrb.mxu3 %v1677_v39  ;;  %534 = vmatpush.msra.mxu0 %v1537_v0 }
  0x40   :  { %555 = vmatpush.msra.mxu1 %v1621_v25  ;;  %446 = vmatpush.msrb.mxu2 %v1667_v37 }
  0x41   :  { %335 = vmatpush.msrb.mxu3 %v1681_v40  ;;  %1251 = vmatmul.msk.f32.gmra.mxu0 %vm78_vm0, %v1807_v59 }
  0x42   :  { %556 = vmatpush.msra.mxu1 %v1638_v31  ;;  %535 = vmatpush.msra.mxu0 %v1539_v1 }
  0x43   :  { %336 = vmatpush.msrb.mxu3 %v1685_v41  ;;  %447 = vmatpush.msrb.mxu2 %v1673_v38 }
  0x44   :  { %557 = vmatpush.msra.mxu1 %v1647_v33  ;;  %536 = vmatpush.msra.mxu0 %v1542_v2 }
  0x45   :  { %337 = vmatpush.msrb.mxu3 %v1691_v42  ;;  %1258 = vmatmul.msk.f32.gmra.mxu1 %vm78_vm0, %v1771_v52 }
  0x46   :  { %558 = vmatpush.msra.mxu1 %v1655_v34  ;;  %448 = vmatpush.msrb.mxu2 %v1677_v39 }
  0x47   :  { %338 = vmatpush.msrb.mxu3 %v1695_v43  ;;  %537 = vmatpush.msra.mxu0 %v1545_v3 }
  0x48   :  { %559 = vmatpush.msra.mxu1 %v1659_v35  ;;  %1263 = vmatmul.msk.f32.gmra.mxu2 %vm78_vm0, %v1644_v32 }
  0x49   :  { %339 = vmatpush.msrb.mxu3 %v1699_v44  ;;  %449 = vmatpush.msrb.mxu2 %v1681_v40 }
  0x4a   :  { %560 = vmatpush.msra.mxu1 %v1663_v36  ;;  %538 = vmatpush.msra.mxu0 %v1551_v5 }
  0x4b   :  { %340 = vmatpush.msrb.mxu3 %v1703_v45  ;;  %450 = vmatpush.msrb.mxu2 %v1685_v41 }
  0x4c   :  { %341 = vmatmul.f32.vlgmr.msrb.gmra.mxu3 %v1614_v23  ;;  %561 = vmatpush.msra.mxu1 %v1667_v37 }
  0x4d   :  { %500 = vmatpush.msra.mxu3 %v1582_v14  ;;  %1259 = vmatmul.msk.f32.gmra.mxu1 %vm78_vm0, %v1807_v59 }
  0x4e   :  { %562 = vmatpush.msra.mxu1 %v1673_v38  ;;  %539 = vmatpush.msra.mxu0 %v1562_v8 }
  0x4f   :  { %501 = vmatpush.msra.mxu3 %v1591_v17  ;;  %451 = vmatpush.msrb.mxu2 %v1691_v42 }
  0x50   :  { %563 = vmatpush.msra.mxu1 %v1677_v39  ;;  %540 = vmatpush.msra.mxu0 %v1567_v9 }
  0x51   :  { %502 = vmatpush.msra.mxu3 %v1600_v20  ;;  %452 = vmatpush.msrb.mxu2 %v1695_v43 }
  0x52   :  { %564 = vmatpush.msra.mxu1 %v1681_v40  ;;  %541 = vmatpush.msra.mxu0 %v1570_v10 }
  0x53   :  { %503 = vmatpush.msra.mxu3 %v1623_v26  ;;  %1264 = vmatmul.msk.f32.gmra.mxu2 %vm78_vm0, %v1738_v46 }
  0x54   :  { %565 = vmatpush.msra.mxu1 %v1685_v41  ;;  %453 = vmatpush.msrb.mxu2 %v1699_v44 }
  0x55   :  { %504 = vmatpush.msra.mxu3 %v1630_v28  ;;  %542 = vmatpush.msra.mxu0 %v1573_v11 }
  0x56   :  { %566 = vmatpush.msra.mxu1 %v1691_v42  ;;  %454 = vmatpush.msrb.mxu2 %v1703_v45 }
  0x57   :  { %505 = vmatpush.msra.mxu3 %v1636_v30  ;;  %543 = vmatpush.msra.mxu0 %v1576_v12 }
  0x58   :  { %567 = vmatpush.msra.mxu1 %v1695_v43  ;;  %615 = vmatpush.msra.mxu2 %v1582_v14 }
  0x59   :  { %506 = vmatpush.msra.mxu3 %v1760_v49  ;;  %544 = vmatpush.msra.mxu0 %v1579_v13 }
  0x5a   :  { %568 = vmatpush.msra.mxu1 %v1699_v44  ;;  %616 = vmatpush.msra.mxu2 %v1591_v17 }
  0x5b   :  { %507 = vmatpush.msra.mxu3 %v1763_v50  ;;  %545 = vmatpush.msra.mxu0 %v1584_v15 }
  0x5c   :  { %569 = vmatpush.msra.mxu1 %v1703_v45  ;;  %1265 = vmatmul.msk.f32.gmra.mxu2 %vm78_vm0, %v1747_v47 }
  0x5d   :  { %508 = vmatpush.msra.mxu3 %v1766_v51  ;;  %546 = vmatpush.msra.mxu0 %v1588_v16 }
  0x5e   :  { %617 = vmatpush.msra.mxu2 %v1600_v20 }
  0x5f   :  { %509 = vmatpush.msra.mxu3 %v1778_v54  ;;  %547 = vmatpush.msra.mxu0 %v1593_v18 }
  0x60   :  { %618 = vmatpush.msra.mxu2 %v1623_v26 }
  0x61   :  { %510 = vmatpush.msra.mxu3 %v1788_v56  ;;  %548 = vmatpush.msra.mxu0 %v1597_v19 }
  0x62   :  { %619 = vmatpush.msra.mxu2 %v1630_v28 }
  0x63   :  { %511 = vmatpush.msra.mxu3 %v1799_v58  ;;  %549 = vmatpush.msra.mxu0 %v1607_v22 }
  0x64   :  { %620 = vmatpush.msra.mxu2 %v1636_v30 }
  0x65   :  { %512 = vmatpush.msra.mxu3 %v1812_v61  ;;  %1266 = vmatmul.msk.f32.gmra.mxu2 %vm78_vm0, %v1771_v52  ;;  %v1935_v52 = vperm.slane %v1796_v57, 1 }
  0x66   :  { %621 = vmatpush.msra.mxu2 %v1760_v49 }
  0x67   :  { %513 = vmatpush.msra.mxu3 %v1817_v63  ;;  %2398 = vst [vmem:[#allocation19_spill] sm:$0xff] %v1935_v52 }
  0x68   :  { %622 = vmatpush.msra.mxu2 %v1763_v50 }
  0x69   :  { %514 = vmatpush.msra.mxu3 %v1826_v6 }
  0x6a   :  { %623 = vmatpush.msra.mxu2 %v1766_v51 }
  0x6b   :  { %515 = vmatpush.msra.mxu3 %v1833_v27 }
  0x6c   :  { %624 = vmatpush.msra.mxu2 %v1778_v54 }
  0x6d   :  { %649 = vmatpush.msrb.mxu3 %v1537_v0  ;;  %1267 = vmatmul.msk.f32.gmra.mxu2 %vm78_vm0, %v1807_v59 }
  0x6e   :  { %625 = vmatpush.msra.mxu2 %v1788_v56 }
  0x6f   :  { %650 = vmatpush.msrb.mxu3 %v1539_v1 }
  0x70   :  { %626 = vmatpush.msra.mxu2 %v1799_v58 }
  0x71   :  { %651 = vmatpush.msrb.mxu3 %v1542_v2 }
  0x72   :  { %627 = vmatpush.msra.mxu2 %v1812_v61 }
  0x73   :  { %652 = vmatpush.msrb.mxu3 %v1545_v3 }
  0x74   :  { %628 = vmatpush.msra.mxu2 %v1817_v63 }
  0x75   :  { %653 = vmatpush.msrb.mxu3 %v1551_v5  ;;  %1268 = vmatmul.msk.f32.gmra.mxu2 %vm78_vm0, %v1752_v48 }
  0x76   :  { %629 = vmatpush.msra.mxu2 %v1826_v6 }
  0x77   :  { %654 = vmatpush.msrb.mxu3 %v1562_v8 }
  0x78   :  { %630 = vmatpush.msra.mxu2 %v1833_v27 }
  0x79   :  { %655 = vmatpush.msrb.mxu3 %v1567_v9 }
  0x7b   :  { %656 = vmatpush.msrb.mxu3 %v1570_v10 }
  0x7d   :  { %657 = vmatpush.msrb.mxu3 %v1573_v11 }
  0x7f   :  { %658 = vmatpush.msrb.mxu3 %v1576_v12 }
  0x81   :  { %659 = vmatpush.msrb.mxu3 %v1579_v13 }
  0x83   :  { %660 = vmatpush.msrb.mxu3 %v1584_v15 }
  0x85   :  { %661 = vmatpush.msrb.mxu3 %v1588_v16 }
  0x87   :  { %662 = vmatpush.msrb.mxu3 %v1593_v18 }
  0x89   :  { %663 = vmatpush.msrb.mxu3 %v1597_v19 }
  0x8b   :  { %664 = vmatpush.msrb.mxu3 %v1607_v22 }
  0x8e   :  { %v120_v62 = vpop.f32.mrf.mxu0 }
  0x8f   :  { %v121_v4 = vadd.f32 %v120_v62, %v1810_v60 }
  0x96   :  { %v1932_v48 = vpop.f32.mrf.mxu0 }
  0x9a   :  { %v161_v59 = vpop.f32.mrf.mxu1 }
  0xaf   :  { %v322_v7 = vpop.f32.mrf.mxu3 }
  0xb0   :  { %v345_v29 = vadd.f32 %v322_v7, %v121_v4 }
  0xb2   :  { %v346_v53 = vsub.f32 0.0, %v345_v29 }
  0xb4   :  { %v347_v55 = vmul.f32 1.442695, %v346_v53 }
  0xb6   :  { %1280 = vpow2.f32 %v347_v55 }
  0xbc   :  { %v1281_v21 = vpop.eup %1280 }
  0xbd   :  { %v349_v62 = vadd.f32 1.0, %v1281_v21 }
  0xbf   :  { %1282 = vrcp.f32 %v349_v62  ;;  %v361_v7 = vand.u32 2147483648, %v349_v62  ;;  %v359_v53 = vand.u32 2147483647, %v349_v62  ;;  %vm355_vm2 = vweird.f32 %v349_v62 }
  0xc1   :  { %v362_v21 = vor.u32 1.1754944e-38, %v361_v7  ;;  %vm360_vm4 = vcmp.eq.f32.partialorder %v359_v53, 8.507059e+37  ;;  %v1938_v7 = vpop.f32.mrf.mxu0  ;;  %v1940_v53 = vpop.f32.mrf.mxu2 }
  0xc2   :  { %2399 = vst [vmem:[#allocation20_spill] sm:$0xff] %v1938_v7  ;;  %v1951_v7 = vperm.slane %v1796_v57, 2 }
  0xc3   :  { %2400 = vst [vmem:[#allocation21_spill] sm:$0xff] %v1940_v53 }
  0xc4   :  { %2405 = vst [vmem:[#allocation26_spill] sm:$0xff] %v1951_v7 }
  0xc5   :  { %v1283_v32 = vpop.eup %1282 }
  0xc6   :  { %v351_v4 = vmul.f32 %v1283_v32, %v349_v62  ;;  %vm356_vm1 = vweird.f32 %v1283_v32  ;;  %v162_v62 = vadd.f32 %v161_v59, %v1935_v52 }
  0xc7   :  { %vm357_vm3 = vmor %vm355_vm2, %vm356_vm1 }
  0xc8   :  { %v352_v46 = vsub.f32 1.0, %v351_v4 }
  0xca   :  { %v353_v29 = vmul.f32 %v1283_v32, %v352_v46 }
  0xcc   :  { %v354_v55 = vadd.f32 %v1283_v32, %v353_v29 }
  0xce   :  { %v358_v4 = vsel %vm357_vm3, %v1283_v32, %v354_v55 }
  0xcf   :  { %v363_v47 = vsel %vm360_vm4, %v362_v21, %v358_v4  ;;  %v342_v32 = vpop.f32.mrf.mxu3  ;;  %v1942_v4 = vpop.f32.mrf.mxu0 }
  0xd0   :  { %v385_v46 = vmul.f32 %v363_v47, %v1614_v23  ;;  %v365_v29 = vadd.f32 %v342_v32, %v162_v62  ;;  %2401 = vst [vmem:[#allocation22_spill] sm:$0xff] %v1942_v4  ;;  %v1944_v47 = vpop.f32.mrf.mxu2 }
  0xd1   :  { %2402 = vst [vmem:[#allocation23_spill] sm:$0xff] %v1944_v47 }
  0xd2   :  { %402 = vmatmul.f32.vlgmr.msrb.gmra.mxu0 %v385_v46  ;;  %v366_v55 = vsub.f32 0.0, %v365_v29 }
  0xd3   :  { %669 = vmatpush.msrb.mxu0 %v1618_v24 }
  0xd4   :  { %v367_v21 = vmul.f32 1.442695, %v366_v55 }
  0xd5   :  { %670 = vmatpush.msrb.mxu0 %v1621_v25 }
  0xd6   :  { %1284 = vpow2.f32 %v367_v21 }
  0xd7   :  { %671 = vmatpush.msrb.mxu0 %v1638_v31 }
  0xd9   :  { %672 = vmatpush.msrb.mxu0 %v1647_v33 }
  0xdb   :  { %673 = vmatpush.msrb.mxu0 %v1655_v34 }
  0xdc   :  { %v1285_v46 = vpop.eup %1284 }
  0xdd   :  { %674 = vmatpush.msrb.mxu0 %v1659_v35 }
  0xdf   :  { %675 = vmatpush.msrb.mxu0 %v1663_v36 }
  0xe1   :  { %676 = vmatpush.msrb.mxu0 %v1667_v37 }
  0xe3   :  { %677 = vmatpush.msrb.mxu0 %v1673_v38 }
  0xe5   :  { %678 = vmatpush.msrb.mxu0 %v1677_v39 }
  0xe7   :  { %679 = vmatpush.msrb.mxu0 %v1681_v40 }
  0xe9   :  { %680 = vmatpush.msrb.mxu0 %v1685_v41 }
  0xeb   :  { %681 = vmatpush.msrb.mxu0 %v1691_v42 }
  0xed   :  { %682 = vmatpush.msrb.mxu0 %v1695_v43  ;;  %v202_v43 = vpop.f32.mrf.mxu2 }
  0xef   :  { %683 = vmatpush.msrb.mxu0 %v1699_v44  ;;  %v369_v44 = vadd.f32 1.0, %v1285_v46 }
  0xf1   :  { %684 = vmatpush.msrb.mxu0 %v1703_v45  ;;  %v1946_v45 = vpop.f32.mrf.mxu0  ;;  %1286 = vrcp.f32 %v369_v44  ;;  %vm375_vm5 = vweird.f32 %v369_v44  ;;  %v381_v57 = vand.u32 2147483648, %v369_v44  ;;  %v379_v52 = vand.u32 2147483647, %v369_v44 }
  0xf2   :  { %2403 = vst [vmem:[#allocation24_spill] sm:$0xff] %v1946_v45 }
  0xf3   :  { %vm380_vm8 = vcmp.eq.f32.partialorder %v379_v52, 8.507059e+37  ;;  %v164_v52 = vpop.f32.mrf.mxu1 }
  0xf5   :  { %v205_v62 = vpop.f32.mrf.mxu2 }
  0xf6   :  { %v1954_v29 = vadd.f32 %v205_v62, %v1951_v7 }
  0xf7   :  { %v1287_v32 = vpop.eup %1286 }
  0xf8   :  { %2406 = vst [vmem:[#allocation27_spill] sm:$0xff] %v1954_v29  ;;  %v371_v55 = vmul.f32 %v1287_v32, %v369_v44  ;;  %vm376_vm6 = vweird.f32 %v1287_v32  ;;  %v382_v29 = vor.u32 1.1754944e-38, %v381_v57  ;;  %v124_v57 = vadd.f32 %v1932_v48, %v1810_v60 }
  0xf9   :  { %v1948_v59 = vpop.f32.mrf.mxu0  ;;  %vm377_vm7 = vmor %vm375_vm5, %vm376_vm6 }
  0xfa   :  { %2404 = vst [vmem:[#allocation25_spill] sm:$0xff] %v1948_v59  ;;  %v372_v21 = vsub.f32 1.0, %v371_v55  ;;  %v203_v59 = vadd.f32 %v202_v43, %v1951_v7 }
  0xfc   :  { %v373_v46 = vmul.f32 %v1287_v32, %v372_v21 }
  0xfd   :  { %v208_v47 = vpop.f32.mrf.mxu2 }
  0xfe   :  { %v1959_v45 = vadd.f32 %v208_v47, %v1951_v7  ;;  %v374_v4 = vadd.f32 %v1287_v32, %v373_v46 }
 0x100   :  { %2408 = vst [vmem:[#allocation29_spill] sm:$0xff] %v1959_v45  ;;  %v378_v41 = vsel %vm377_vm7, %v1287_v32, %v374_v4 }
 0x101   :  { %v1956_v53 = vpop.f32.mrf.mxu0  ;;  %v383_v47 = vsel %vm380_vm8, %v382_v29, %v378_v41 }
 0x102   :  { %2407 = vst [vmem:[#allocation28_spill] sm:$0xff] %v1956_v53  ;;  %v409_v43 = vsub.f32 1.0, %v383_v47  ;;  %v408_v44 = vmul.f32 %v383_v47, %v1614_v23 }
 0x105   :  { %v211_v42 = vpop.f32.mrf.mxu2 }
 0x106   :  { %v1963_v62 = vadd.f32 %v211_v42, %v1951_v7 }
 0x108   :  { %2409 = vst [vmem:[#allocation30_spill] sm:$0xff] %v1963_v62 }
 0x10d   :  { %v214_v21 = vpop.f32.mrf.mxu2 }
 0x10e   :  { %v1966_v45 = vadd.f32 %v214_v21, %v1951_v7 }
 0x110   :  { %2410 = vst [vmem:[#allocation31_spill] sm:$0xff] %v1966_v45 }
 0x115   :  { %v217_v42 = vpop.f32.mrf.mxu2 }
 0x116   :  { %v1975_v41 = vadd.f32 %v217_v42, %v1951_v7 }
 0x118   :  { %2411 = vst [vmem:[#allocation32_spill] sm:$0xff] %v1975_v41 }
 0x11d   :  { %v220_v23 = vpop.f32.mrf.mxu2 }
 0x14f   :  { %v403_v55 = vpop.f32.mrf.mxu0 }
 0x150   :  { %v406_v53 = vadd.f32 %v403_v55, %v203_v59 }
 0x152   :  { %1288 = vtanh.f32 %v406_v53  ;;  %v2012_v53 = vpop.f32.mrf.mxu1 }
 0x153   :  { %2413 = vst [vmem:[#allocation34_spill] sm:$0xff] %v2012_v53 }
 0x158   :  { %v1289_v40 = vpop.eup %1288 }
 0x159   :  { %v410_v46 = vmul.f32 %v1289_v40, %v409_v43  ;;  %v1986_v40 = vadd.f32 %v220_v23, %v1951_v7 }
 0x15a   :  { %v2014_v4 = vpop.f32.mrf.mxu1 }
 0x15b   :  { %v1969_v39 = vadd.f32 %v410_v46, %v408_v44  ;;  %2412 = vst [vmem:[#allocation33_spill] sm:$0xff] %v1986_v40 }
 0x15c   :  { %2414 = vst [vmem:[#allocation35_spill] sm:$0xff] %v2014_v4 }
 0x15d   :  { %412 = vst [vmem:[#allocation8] sm:$0xff] %v1969_v39  ;;  %435 = vmatmul.f32.vlgmr.msrb.gmra.mxu1 %v1969_v39  ;;  %455 = vmatmul.f32.vlgmr.msrb.gmra.mxu2 %v1969_v39 }
 0x15e   :  { %730 = vmatpush.msrb.mxu1 %v1582_v14  ;;  %764 = vmatpush.msrb.mxu2 %v1537_v0 }
 0x160   :  { %731 = vmatpush.msrb.mxu1 %v1591_v17  ;;  %765 = vmatpush.msrb.mxu2 %v1539_v1 }
 0x162   :  { %732 = vmatpush.msrb.mxu1 %v1600_v20  ;;  %766 = vmatpush.msrb.mxu2 %v1542_v2  ;;  %v2016_v59 = vpop.f32.mrf.mxu1 }
 0x163   :  { %2415 = vst [vmem:[#allocation36_spill] sm:$0xff] %v2016_v59 }
 0x164   :  { %733 = vmatpush.msrb.mxu1 %v1623_v26  ;;  %767 = vmatpush.msrb.mxu2 %v1545_v3 }
 0x166   :  { %734 = vmatpush.msrb.mxu1 %v1630_v28  ;;  %768 = vmatpush.msrb.mxu2 %v1551_v5 }
 0x168   :  { %735 = vmatpush.msrb.mxu1 %v1636_v30  ;;  %769 = vmatpush.msrb.mxu2 %v1562_v8 }
 0x16a   :  { %736 = vmatpush.msrb.mxu1 %v1760_v49  ;;  %770 = vmatpush.msrb.mxu2 %v1567_v9  ;;  %v2018_v32 = vpop.f32.mrf.mxu1 }
 0x16b   :  { %2416 = vst [vmem:[#allocation37_spill] sm:$0xff] %v2018_v32 }
 0x16c   :  { %737 = vmatpush.msrb.mxu1 %v1763_v50  ;;  %771 = vmatpush.msrb.mxu2 %v1570_v10 }
 0x16e   :  { %738 = vmatpush.msrb.mxu1 %v1766_v51  ;;  %772 = vmatpush.msrb.mxu2 %v1573_v11 }
 0x170   :  { %739 = vmatpush.msrb.mxu1 %v1778_v54  ;;  %773 = vmatpush.msrb.mxu2 %v1576_v12 }
 0x172   :  { %740 = vmatpush.msrb.mxu1 %v1788_v56  ;;  %774 = vmatpush.msrb.mxu2 %v1579_v13  ;;  %v2020_v29 = vpop.f32.mrf.mxu1 }
 0x173   :  { %2417 = vst [vmem:[#allocation38_spill] sm:$0xff] %v2020_v29 }
 0x174   :  { %741 = vmatpush.msrb.mxu1 %v1799_v58  ;;  %775 = vmatpush.msrb.mxu2 %v1584_v15 }
 0x176   :  { %742 = vmatpush.msrb.mxu1 %v1812_v61  ;;  %776 = vmatpush.msrb.mxu2 %v1588_v16 }
 0x178   :  { %743 = vmatpush.msrb.mxu1 %v1817_v63  ;;  %777 = vmatpush.msrb.mxu2 %v1593_v18 }
 0x17a   :  { %744 = vmatpush.msrb.mxu1 %v1826_v6  ;;  %778 = vmatpush.msrb.mxu2 %v1597_v19 }
 0x17c   :  { %745 = vmatpush.msrb.mxu1 %v1833_v27  ;;  %779 = vmatpush.msrb.mxu2 %v1607_v22 }
 0x1da   :  { %v436_v55 = vpop.f32.mrf.mxu1 }
 0x1db   :  { %v459_v47 = vadd.f32 %v436_v55, %v124_v57 }
 0x1dd   :  { %v460_v21 = vsub.f32 0.0, %v459_v47  ;;  %v2424_v47 = vld [vmem:[#allocation18_spill] sm:$0xff] }
 0x1df   :  { %v461_v43 = vmul.f32 1.442695, %v460_v21  ;;  %v2041_v21 = vpop.f32.mrf.mxu2 }
 0x1e1   :  { %1290 = vpow2.f32 %v461_v43 }
 0x1e7   :  { %v1291_v44 = vpop.eup %1290  ;;  %v456_v43 = vpop.f32.mrf.mxu2 }
 0x1e8   :  { %v463_v46 = vadd.f32 1.0, %v1291_v44  ;;  %v2426_v44 = vld [vmem:[#allocation19_spill] sm:$0xff] }
 0x1ea   :  { %1292 = vrcp.f32 %v463_v46  ;;  %v475_v40 = vand.u32 2147483648, %v463_v46  ;;  %v473_v32 = vand.u32 2147483647, %v463_v46  ;;  %vm469_vm10 = vweird.f32 %v463_v46 }
 0x1ec   :  { %v476_v29 = vor.u32 1.1754944e-38, %v475_v40  ;;  %vm474_vm12 = vcmp.eq.f32.partialorder %v473_v32, 8.507059e+37  ;;  %v2421_v40 = vld [vmem:[#allocation15_spill] sm:$0xff]  ;;  %v2422_v32 = vld [vmem:[#allocation16_spill] sm:$0xff] }
 0x1f0   :  { %v1293_v42 = vpop.eup %1292 }
 0x1f1   :  { %v465_v23 = vmul.f32 %v1293_v42, %v463_v46  ;;  %vm470_vm9 = vweird.f32 %v1293_v42  ;;  %v165_v46 = vadd.f32 %v164_v52, %v2426_v44 }
 0x1f2   :  { %vm471_vm11 = vmor %vm469_vm10, %vm470_vm9 }
 0x1f3   :  { %v466_v7 = vsub.f32 1.0, %v465_v23 }
 0x1f5   :  { %v467_v41 = vmul.f32 %v1293_v42, %v466_v7  ;;  %v2419_v7 = vld [vmem:[#allocation13_spill] sm:$0xff] }
 0x1f7   :  { %v468_v45 = vadd.f32 %v1293_v42, %v467_v41  ;;  %v2420_v41 = vld [vmem:[#allocation14_spill] sm:$0xff] }
 0x1f9   :  { %v472_v48 = vsel %vm471_vm11, %v1293_v42, %v468_v45  ;;  %v2418_v45 = vld [vmem:[#allocation12_spill] sm:$0xff]  ;;  %v479_v42 = vadd.f32 %v456_v43, %v165_v46 }
 0x1fa   :  { %v477_v57 = vsel %vm474_vm12, %v476_v29, %v472_v48  ;;  %v2423_v29 = vld [vmem:[#allocation17_spill] sm:$0xff]  ;;  %2425 = vst [vmem:[#allocation12_spill] sm:$0xff] %v2041_v21 }
 0x1fb   :  { %v499_v55 = vmul.f32 %v477_v57, %v1969_v39  ;;  %v480_v23 = vsub.f32 0.0, %v479_v42 }
 0x1fd   :  { %516 = vmatmul.f32.vlgmr.msra.gmra.mxu3 %v499_v55  ;;  %v481_v48 = vmul.f32 1.442695, %v480_v23 }
 0x1fe   :  { %784 = vmatpush.msra.mxu3 %v1618_v24 }
 0x1ff   :  { %1294 = vpow2.f32 %v481_v48 }
 0x200   :  { %785 = vmatpush.msra.mxu3 %v1621_v25 }
 0x202   :  { %786 = vmatpush.msra.mxu3 %v1638_v31 }
 0x204   :  { %787 = vmatpush.msra.mxu3 %v1647_v33 }
 0x205   :  { %v1295_v57 = vpop.eup %1294 }
 0x206   :  { %788 = vmatpush.msra.mxu3 %v1655_v34  ;;  %v483_v55 = vadd.f32 1.0, %v1295_v57 }
 0x208   :  { %789 = vmatpush.msra.mxu3 %v1659_v35  ;;  %1296 = vrcp.f32 %v483_v55  ;;  %vm489_vm14 = vweird.f32 %v483_v55 }
 0x20a   :  { %790 = vmatpush.msra.mxu3 %v1663_v36 }
 0x20c   :  { %791 = vmatpush.msra.mxu3 %v1667_v37 }
 0x20e   :  { %792 = vmatpush.msra.mxu3 %v1673_v38  ;;  %v1297_v59 = vpop.eup %1296 }
 0x20f   :  { %v485_v62 = vmul.f32 %v1297_v59, %v483_v55  ;;  %vm490_vm13 = vweird.f32 %v1297_v59 }
 0x210   :  { %793 = vmatpush.msra.mxu3 %v2418_v45  ;;  %vm491_vm15 = vmor %vm489_vm14, %vm490_vm13 }
 0x211   :  { %v486_v4 = vsub.f32 1.0, %v485_v62 }
 0x212   :  { %794 = vmatpush.msra.mxu3 %v2419_v7 }
 0x213   :  { %v487_v53 = vmul.f32 %v1297_v59, %v486_v4 }
 0x214   :  { %795 = vmatpush.msra.mxu3 %v2420_v41 }
 0x216   :  { %796 = vmatpush.msra.mxu3 %v2421_v40  ;;  %v2427_v40 = vld [vmem:[#allocation27_spill] sm:$0xff] }
 0x218   :  { %797 = vmatpush.msra.mxu3 %v2422_v32  ;;  %v488_v32 = vadd.f32 %v1297_v59, %v487_v53 }
 0x21a   :  { %798 = vmatpush.msra.mxu3 %v2423_v29  ;;  %v495_v29 = vand.u32 2147483648, %v483_v55  ;;  %v492_v43 = vsel %vm491_vm15, %v1297_v59, %v488_v32 }
 0x21c   :  { %799 = vmatpush.msra.mxu3 %v2424_v47  ;;  %v493_v47 = vand.u32 2147483647, %v483_v55  ;;  %v496_v46 = vor.u32 1.1754944e-38, %v495_v29  ;;  %v2434_v29 = vld [vmem:[#allocation29_spill] sm:$0xff] }
 0x21e   :  { %vm494_vm0 = vcmp.eq.f32.partialorder %v493_v47, 8.507059e+37 }
 0x21f   :  { %v497_v42 = vsel %vm494_vm0, %v496_v46, %v492_v43 }
 0x220   :  { %v523_v23 = vsub.f32 1.0, %v497_v42  ;;  %v522_v57 = vmul.f32 %v497_v42, %v1969_v39 }
 0x280   :  { %v517_v21 = vpop.f32.mrf.mxu3 }
 0x281   :  { %v520_v52 = vadd.f32 %v517_v21, %v2427_v40 }
 0x283   :  { %1298 = vtanh.f32 %v520_v52 }
 0x289   :  { %v1299_v48 = vpop.eup %1298 }
 0x28a   :  { %v524_v62 = vmul.f32 %v1299_v48, %v523_v23 }
 0x28c   :  { %v2046_v4 = vadd.f32 %v524_v62, %v522_v57  ;;  %v2111_v57 = vld [vmem:[#allocation6 + $0x78] sm:$0xff]  ;;  %v2114_v62 = vld [vmem:[#allocation3 + $0xf0] sm:$0xff] }
 0x28e   :  { %527 = vst [vmem:[#allocation8 + $0x8] sm:$0xff] %v2046_v4  ;;  %550 = vmatmul.f32.vlgmr.msra.gmra.mxu0 %v2046_v4  ;;  %570 = vmatmul.f32.vlgmr.msra.gmra.mxu1 %v2046_v4 }
 0x28f   :  { %845 = vmatpush.msra.mxu0 %v1582_v14  ;;  %879 = vmatpush.msra.mxu1 %v1537_v0  ;;  %v2428_v0 = vld [vmem:[#allocation20_spill] sm:$0xff] }
 0x291   :  { %846 = vmatpush.msra.mxu0 %v1591_v17  ;;  %880 = vmatpush.msra.mxu1 %v1539_v1  ;;  %v127_v1 = vadd.f32 %v2428_v0, %v1810_v60  ;;  %v2117_v0 = vld [vmem:[#allocation6 + $0x70] sm:$0xff] }
 0x293   :  { %847 = vmatpush.msra.mxu0 %v1600_v20  ;;  %881 = vmatpush.msra.mxu1 %v1542_v2 }
 0x295   :  { %848 = vmatpush.msra.mxu0 %v1623_v26  ;;  %882 = vmatpush.msra.mxu1 %v1545_v3  ;;  %v2431_v26 = vld [vmem:[#allocation17_spill] sm:$0xff] }
 0x297   :  { %849 = vmatpush.msra.mxu0 %v1630_v28  ;;  %883 = vmatpush.msra.mxu1 %v1551_v5  ;;  %v2432_v28 = vld [vmem:[#allocation18_spill] sm:$0xff] }
 0x299   :  { %850 = vmatpush.msra.mxu0 %v1636_v30  ;;  %884 = vmatpush.msra.mxu1 %v1562_v8 }
 0x29b   :  { %851 = vmatpush.msra.mxu0 %v1760_v49  ;;  %885 = vmatpush.msra.mxu1 %v1567_v9 }
 0x29d   :  { %852 = vmatpush.msra.mxu0 %v1763_v50  ;;  %886 = vmatpush.msra.mxu1 %v1570_v10 }
 0x29f   :  { %853 = vmatpush.msra.mxu0 %v1766_v51  ;;  %887 = vmatpush.msra.mxu1 %v1573_v11 }
 0x2a1   :  { %854 = vmatpush.msra.mxu0 %v1778_v54  ;;  %888 = vmatpush.msra.mxu1 %v1576_v12 }
 0x2a3   :  { %855 = vmatpush.msra.mxu0 %v1788_v56  ;;  %889 = vmatpush.msra.mxu1 %v1579_v13 }
 0x2a5   :  { %856 = vmatpush.msra.mxu0 %v1799_v58  ;;  %890 = vmatpush.msra.mxu1 %v1584_v15 }
 0x2a7   :  { %857 = vmatpush.msra.mxu0 %v1812_v61  ;;  %891 = vmatpush.msra.mxu1 %v1588_v16 }
 0x2a9   :  { %858 = vmatpush.msra.mxu0 %v1817_v63  ;;  %892 = vmatpush.msra.mxu1 %v1593_v18 }
 0x2ab   :  { %859 = vmatpush.msra.mxu0 %v1826_v6  ;;  %893 = vmatpush.msra.mxu1 %v1597_v19 }
 0x2ad   :  { %860 = vmatpush.msra.mxu0 %v1833_v27  ;;  %894 = vmatpush.msra.mxu1 %v1607_v22 }
 0x30b   :  { %v551_v2 = vpop.f32.mrf.mxu0  ;;  %v571_v30 = vpop.f32.mrf.mxu1 }
 0x30c   :  { %v574_v3 = vadd.f32 %v551_v2, %v127_v1  ;;  %v2123_v1 = vld [vmem:[#allocation6 + $0x68] sm:$0xff]  ;;  %v2126_v2 = vld [vmem:[#allocation3 + $0xd0] sm:$0xff] }
 0x30e   :  { %v575_v5 = vsub.f32 0.0, %v574_v3  ;;  %v2129_v3 = vld [vmem:[#allocation6 + $0x60] sm:$0xff] }
 0x310   :  { %v576_v8 = vmul.f32 1.442695, %v575_v5  ;;  %v2132_v5 = vld [vmem:[#allocation3 + $0xc0] sm:$0xff] }
 0x312   :  { %1300 = vpow2.f32 %v576_v8  ;;  %v2135_v8 = vld [vmem:[#allocation6 + $0x58] sm:$0xff] }
 0x318   :  { %v1301_v9 = vpop.eup %1300 }
 0x319   :  { %v578_v10 = vadd.f32 1.0, %v1301_v9  ;;  %v2138_v9 = vld [vmem:[#allocation3 + $0xb0] sm:$0xff] }
 0x31b   :  { %1302 = vrcp.f32 %v578_v10  ;;  %v590_v14 = vand.u32 2147483648, %v578_v10  ;;  %v588_v16 = vand.u32 2147483647, %v578_v10  ;;  %vm584_vm2 = vweird.f32 %v578_v10 }
 0x31d   :  { %v591_v18 = vor.u32 1.1754944e-38, %v590_v14  ;;  %vm589_vm4 = vcmp.eq.f32.partialorder %v588_v16, 8.507059e+37  ;;  %v2156_v14 = vld [vmem:[#allocation3 + $0x70] sm:$0xff] }
 0x321   :  { %v1303_v11 = vpop.eup %1302 }
 0x322   :  { %v580_v12 = vmul.f32 %v1303_v11, %v578_v10  ;;  %vm585_vm1 = vweird.f32 %v1303_v11  ;;  %v2141_v10 = vld [vmem:[#allocation6 + $0x50] sm:$0xff] }
 0x323   :  { %vm586_vm3 = vmor %vm584_vm2, %vm585_vm1 }
 0x324   :  { %v581_v13 = vsub.f32 1.0, %v580_v12  ;;  %v2148_v12 = vld [vmem:[#allocation3 + $0x90] sm:$0xff] }
 0x326   :  { %v582_v15 = vmul.f32 %v1303_v11, %v581_v13  ;;  %v2152_v13 = vld [vmem:[#allocation3 + $0x80] sm:$0xff] }
 0x328   :  { %v583_v17 = vadd.f32 %v1303_v11, %v582_v15  ;;  %v2160_v15 = vld [vmem:[#allocation3 + $0x60] sm:$0xff] }
 0x32a   :  { %v587_v19 = vsel %vm586_vm3, %v1303_v11, %v583_v17  ;;  %v2144_v11 = vld [vmem:[#allocation3 + $0xa0] sm:$0xff] }
 0x32b   :  { %v592_v20 = vsel %vm589_vm4, %v591_v18, %v587_v19 }
 0x32c   :  { %v614_v22 = vmul.f32 %v592_v20, %v2046_v4 }
 0x32e   :  { %631 = vmatmul.f32.vlgmr.msra.gmra.mxu2 %v614_v22 }
 0x32f   :  { %899 = vmatpush.msra.mxu2 %v1618_v24  ;;  %v2429_v24 = vld [vmem:[#allocation15_spill] sm:$0xff] }
 0x331   :  { %900 = vmatpush.msra.mxu2 %v1621_v25  ;;  %v2430_v25 = vld [vmem:[#allocation16_spill] sm:$0xff] }
 0x333   :  { %901 = vmatpush.msra.mxu2 %v1638_v31  ;;  %v2433_v31 = vld [vmem:[#allocation34_spill] sm:$0xff] }
 0x335   :  { %902 = vmatpush.msra.mxu2 %v1647_v33  ;;  %v168_v33 = vadd.f32 %v2433_v31, %v2426_v44 }
 0x337   :  { %903 = vmatpush.msra.mxu2 %v1655_v34  ;;  %v594_v34 = vadd.f32 %v571_v30, %v168_v33 }
 0x339   :  { %904 = vmatpush.msra.mxu2 %v1659_v35  ;;  %v595_v35 = vsub.f32 0.0, %v594_v34 }
 0x33b   :  { %905 = vmatpush.msra.mxu2 %v1663_v36  ;;  %v596_v36 = vmul.f32 1.442695, %v595_v35 }
 0x33d   :  { %906 = vmatpush.msra.mxu2 %v1667_v37  ;;  %1304 = vpow2.f32 %v596_v36  ;;  %v2190_v36 = vld [vmem:[#allocation3 + $0xf8] sm:$0xff] }
 0x33f   :  { %907 = vmatpush.msra.mxu2 %v1673_v38 }
 0x341   :  { %908 = vmatpush.msra.mxu2 %v2418_v45 }
 0x343   :  { %909 = vmatpush.msra.mxu2 %v2419_v7  ;;  %v1305_v37 = vpop.eup %1304 }
 0x344   :  { %v598_v38 = vadd.f32 1.0, %v1305_v37  ;;  %v2193_v37 = vld [vmem:[#allocation3 + $0xe8] sm:$0xff] }
 0x345   :  { %910 = vmatpush.msra.mxu2 %v2420_v41 }
 0x346   :  { %1306 = vrcp.f32 %v598_v38  ;;  %v610_v41 = vand.u32 2147483648, %v598_v38  ;;  %vm604_vm6 = vweird.f32 %v598_v38  ;;  %v608_v40 = vand.u32 2147483647, %v598_v38 }
 0x347   :  { %911 = vmatpush.msra.mxu2 %v2429_v24 }
 0x348   :  { %v611_v55 = vor.u32 1.1754944e-38, %v610_v41  ;;  %vm609_vm8 = vcmp.eq.f32.partialorder %v608_v40, 8.507059e+37  ;;  %v2214_v41 = vld [vmem:[#allocation3 + $0x78] sm:$0xff]  ;;  %v2217_v40 = vld [vmem:[#allocation3 + $0x68] sm:$0xff] }
 0x349   :  { %912 = vmatpush.msra.mxu2 %v2430_v25 }
 0x34b   :  { %913 = vmatpush.msra.mxu2 %v2431_v26 }
 0x34c   :  { %v1307_v39 = vpop.eup %1306 }
 0x34d   :  { %914 = vmatpush.msra.mxu2 %v2432_v28  ;;  %v600_v53 = vmul.f32 %v1307_v39, %v598_v38  ;;  %vm605_vm5 = vweird.f32 %v1307_v39  ;;  %v2196_v38 = vld [vmem:[#allocation3 + $0xd8] sm:$0xff] }
 0x34e   :  { %vm606_vm7 = vmor %vm604_vm6, %vm605_vm5 }
 0x34f   :  { %v601_v59 = vsub.f32 1.0, %v600_v53  ;;  %v2202_v53 = vld [vmem:[#allocation3 + $0xb8] sm:$0xff] }
 0x351   :  { %v602_v45 = vmul.f32 %v1307_v39, %v601_v59  ;;  %v2205_v59 = vld [vmem:[#allocation3 + $0xa8] sm:$0xff] }
 0x353   :  { %v603_v7 = vadd.f32 %v1307_v39, %v602_v45  ;;  %v2208_v45 = vld [vmem:[#allocation3 + $0x98] sm:$0xff] }
 0x355   :  { %v607_v21 = vsel %vm606_vm7, %v1307_v39, %v603_v7  ;;  %v2199_v39 = vld [vmem:[#allocation3 + $0xc8] sm:$0xff] }
 0x356   :  { %v612_v52 = vsel %vm609_vm8, %v611_v55, %v607_v21  ;;  %v2211_v7 = vld [vmem:[#allocation3 + $0x88] sm:$0xff]  ;;  %v2232_v55 = vld [vmem:[#allocation3 + $0x18] sm:$0xff] }
 0x357   :  { %v638_v43 = vsub.f32 1.0, %v612_v52  ;;  %v637_v42 = vmul.f32 %v612_v52, %v2046_v4  ;;  %v2120_v4 = vld [vmem:[#allocation3 + $0xe0] sm:$0xff]  ;;  %v2229_v21 = vld [vmem:[#allocation3 + $0x28] sm:$0xff] }
 0x358   :  { %v2235_v52 = vld [vmem:[#allocation3 + $0x8] sm:$0xff] }
 0x3b1   :  { %v632_v32 = vpop.f32.mrf.mxu2 }
 0x3b2   :  { %v635_v47 = vadd.f32 %v632_v32, %v2434_v29  ;;  %v2220_v32 = vld [vmem:[#allocation3 + $0x58] sm:$0xff]  ;;  %v2223_v29 = vld [vmem:[#allocation3 + $0x48] sm:$0xff] }
 0x3b4   :  { %1308 = vtanh.f32 %v635_v47  ;;  %v2226_v47 = vld [vmem:[#allocation3 + $0x38] sm:$0xff] }
 0x3ba   :  { %v1309_v46 = vpop.eup %1308 }
 0x3bb   :  { %v639_v23 = vmul.f32 %v1309_v46, %v638_v43  ;;  %v2436_v46 = vld [vmem:[#allocation35_spill] sm:$0xff] }
 0x3bd   :  { %v2106_v48 = vadd.f32 %v639_v23, %v637_v42  ;;  %v171_v42 = vadd.f32 %v2436_v46, %v2426_v44 }
 0x3bf   :  { %642 = vst [vmem:[#allocation8 + $0x10] sm:$0xff] %v2106_v48  ;;  %665 = vmatmul.f32.vlgmr.msrb.gmra.mxu3 %v2106_v48  ;;  %685 = vmatmul.f32.vlgmr.msrb.gmra.mxu0 %v2106_v48 }
 0x3c0   :  { %960 = vmatpush.msrb.mxu3 %v2111_v57  ;;  %994 = vmatpush.msrb.mxu0 %v2114_v62 }
 0x3c2   :  { %961 = vmatpush.msrb.mxu3 %v2117_v0  ;;  %995 = vmatpush.msrb.mxu0 %v2120_v4 }
 0x3c4   :  { %962 = vmatpush.msrb.mxu3 %v2123_v1  ;;  %996 = vmatpush.msrb.mxu0 %v2126_v2 }
 0x3c6   :  { %963 = vmatpush.msrb.mxu3 %v2129_v3  ;;  %997 = vmatpush.msrb.mxu0 %v2132_v5 }
 0x3c8   :  { %964 = vmatpush.msrb.mxu3 %v2135_v8  ;;  %998 = vmatpush.msrb.mxu0 %v2138_v9 }
 0x3ca   :  { %965 = vmatpush.msrb.mxu3 %v2141_v10  ;;  %999 = vmatpush.msrb.mxu0 %v2144_v11 }
 0x3cc   :  { %966 = vmatpush.msrb.mxu3 %v1760_v49  ;;  %1000 = vmatpush.msrb.mxu0 %v2148_v12  ;;  %v2164_v49 = vld [vmem:[#allocation3 + $0x50] sm:$0xff] }
 0x3ce   :  { %967 = vmatpush.msrb.mxu3 %v1763_v50  ;;  %1001 = vmatpush.msrb.mxu0 %v2152_v13  ;;  %v2168_v50 = vld [vmem:[#allocation3 + $0x40] sm:$0xff] }
 0x3d0   :  { %968 = vmatpush.msrb.mxu3 %v1766_v51  ;;  %1002 = vmatpush.msrb.mxu0 %v2156_v14  ;;  %v2172_v51 = vld [vmem:[#allocation3 + $0x30] sm:$0xff] }
 0x3d2   :  { %969 = vmatpush.msrb.mxu3 %v1778_v54  ;;  %1003 = vmatpush.msrb.mxu0 %v2160_v15  ;;  %v2176_v54 = vld [vmem:[#allocation3 + $0x20] sm:$0xff] }
 0x3d4   :  { %970 = vmatpush.msrb.mxu3 %v1788_v56  ;;  %1004 = vmatpush.msrb.mxu0 %v2164_v49  ;;  %v2180_v56 = vld [vmem:[#allocation3 + $0x10] sm:$0xff] }
 0x3d6   :  { %971 = vmatpush.msrb.mxu3 %v1799_v58  ;;  %1005 = vmatpush.msrb.mxu0 %v2168_v50  ;;  %v2184_v58 = vld [vmem:[#allocation3] sm:$0xff] }
 0x3d8   :  { %972 = vmatpush.msrb.mxu3 %v1812_v61  ;;  %1006 = vmatpush.msrb.mxu0 %v2172_v51  ;;  %v2435_v61 = vld [vmem:[#allocation22_spill] sm:$0xff] }
 0x3d9   :  { %v130_v16 = vadd.f32 %v2435_v61, %v1810_v60 }
 0x3da   :  { %973 = vmatpush.msrb.mxu3 %v1817_v63  ;;  %1007 = vmatpush.msrb.mxu0 %v2176_v54 }
 0x3dc   :  { %974 = vmatpush.msrb.mxu3 %v1826_v6  ;;  %1008 = vmatpush.msrb.mxu0 %v2180_v56 }
 0x3de   :  { %975 = vmatpush.msrb.mxu3 %v1833_v27  ;;  %1009 = vmatpush.msrb.mxu0 %v2184_v58 }
 0x43c   :  { %v686_v43 = vpop.f32.mrf.mxu0 }
 0x43d   :  { %v709_v23 = vadd.f32 %v686_v43, %v171_v42 }
 0x43f   :  { %v710_v61 = vsub.f32 0.0, %v709_v23 }
 0x442   :  { %v666_v63 = vpop.f32.mrf.mxu3 }
 0x443   :  { %v689_v17 = vadd.f32 %v666_v63, %v130_v16  ;;  %v711_v16 = vmul.f32 1.442695, %v710_v61 }
 0x445   :  { %v690_v18 = vsub.f32 0.0, %v689_v17 }
 0x447   :  { %v691_v19 = vmul.f32 1.442695, %v690_v18 }
 0x449   :  { %1310 = vpow2.f32 %v691_v19 }
 0x44f   :  { %v1311_v20 = vpop.eup %1310 }
 0x450   :  { %v693_v6 = vadd.f32 1.0, %v1311_v20 }
 0x452   :  { %1312 = vrcp.f32 %v693_v6  ;;  %v705_v26 = vand.u32 2147483648, %v693_v6  ;;  %v703_v28 = vand.u32 2147483647, %v693_v6  ;;  %vm699_vm10 = vweird.f32 %v693_v6 }
 0x453   :  { %1314 = vpow2.f32 %v711_v16 }
 0x454   :  { %v706_v31 = vor.u32 1.1754944e-38, %v705_v26  ;;  %vm704_vm12 = vcmp.eq.f32.partialorder %v703_v28, 8.507059e+37 }
 0x458   :  { %v1313_v22 = vpop.eup %1312 }
 0x459   :  { %v695_v24 = vmul.f32 %v1313_v22, %v693_v6  ;;  %vm700_vm9 = vweird.f32 %v1313_v22  ;;  %v1315_v63 = vpop.eup %1314 }
 0x45a   :  { %vm701_vm11 = vmor %vm699_vm10, %vm700_vm9  ;;  %v713_v17 = vadd.f32 1.0, %v1315_v63 }
 0x45b   :  { %v696_v25 = vsub.f32 1.0, %v695_v24 }
 0x45c   :  { %1316 = vrcp.f32 %v713_v17  ;;  %v725_v24 = vand.u32 2147483648, %v713_v17  ;;  %vm719_vm14 = vweird.f32 %v713_v17 }
 0x45d   :  { %v697_v27 = vmul.f32 %v1313_v22, %v696_v25  ;;  %v723_v25 = vand.u32 2147483647, %v713_v17 }
 0x45f   :  { %v698_v30 = vadd.f32 %v1313_v22, %v697_v27  ;;  %v2437_v27 = vld [vmem:[#allocation30_spill] sm:$0xff]  ;;  %vm724_vm0 = vcmp.eq.f32.partialorder %v723_v25, 8.507059e+37 }
 0x461   :  { %v702_v33 = vsel %vm701_vm11, %v1313_v22, %v698_v30 }
 0x462   :  { %v707_v34 = vsel %vm704_vm12, %v706_v31, %v702_v33  ;;  %v1317_v18 = vpop.eup %1316  ;;  %v726_v31 = vor.u32 1.1754944e-38, %v725_v24 }
 0x463   :  { %v729_v35 = vmul.f32 %v707_v34, %v2106_v48  ;;  %v715_v19 = vmul.f32 %v1317_v18, %v713_v17  ;;  %vm720_vm13 = vweird.f32 %v1317_v18 }
 0x464   :  { %vm721_vm15 = vmor %vm719_vm14, %vm720_vm13 }
 0x465   :  { %746 = vmatmul.f32.vlgmr.msrb.gmra.mxu1 %v729_v35  ;;  %v716_v20 = vsub.f32 1.0, %v715_v19 }
 0x466   :  { %1014 = vmatpush.msrb.mxu1 %v2190_v36 }
 0x467   :  { %v717_v6 = vmul.f32 %v1317_v18, %v716_v20 }
 0x468   :  { %1015 = vmatpush.msrb.mxu1 %v2193_v37 }
 0x469   :  { %v718_v22 = vadd.f32 %v1317_v18, %v717_v6 }
 0x46a   :  { %1016 = vmatpush.msrb.mxu1 %v2196_v38 }
 0x46b   :  { %v722_v30 = vsel %vm721_vm15, %v1317_v18, %v718_v22 }
 0x46c   :  { %1017 = vmatpush.msrb.mxu1 %v2199_v39  ;;  %v727_v33 = vsel %vm724_vm0, %v726_v31, %v722_v30 }
 0x46d   :  { %v753_v34 = vsub.f32 1.0, %v727_v33  ;;  %v752_v43 = vmul.f32 %v727_v33, %v2106_v48  ;;  %v2259_v48 = vld [vmem:[#allocation6 + $0x48] sm:$0xff] }
 0x46e   :  { %1018 = vmatpush.msrb.mxu1 %v2202_v53 }
 0x470   :  { %1019 = vmatpush.msrb.mxu1 %v2205_v59 }
 0x472   :  { %1020 = vmatpush.msrb.mxu1 %v2208_v45 }
 0x474   :  { %1021 = vmatpush.msrb.mxu1 %v2211_v7 }
 0x476   :  { %1022 = vmatpush.msrb.mxu1 %v2214_v41 }
 0x478   :  { %1023 = vmatpush.msrb.mxu1 %v2217_v40 }
 0x47a   :  { %1024 = vmatpush.msrb.mxu1 %v2220_v32 }
 0x47c   :  { %1025 = vmatpush.msrb.mxu1 %v2223_v29 }
 0x47e   :  { %1026 = vmatpush.msrb.mxu1 %v2226_v47 }
 0x480   :  { %1027 = vmatpush.msrb.mxu1 %v2229_v21 }
 0x482   :  { %1028 = vmatpush.msrb.mxu1 %v2232_v55 }
 0x484   :  { %1029 = vmatpush.msrb.mxu1 %v2235_v52 }
 0x4e2   :  { %v747_v26 = vpop.f32.mrf.mxu1 }
 0x4e3   :  { %v750_v28 = vadd.f32 %v747_v26, %v2437_v27  ;;  %v2440_v26 = vld [vmem:[#allocation31_spill] sm:$0xff] }
 0x4e5   :  { %1318 = vtanh.f32 %v750_v28 }
 0x4eb   :  { %v1319_v35 = vpop.eup %1318 }
 0x4ec   :  { %v754_v46 = vmul.f32 %v1319_v35, %v753_v34 }
 0x4ee   :  { %v2242_v42 = vadd.f32 %v754_v46, %v752_v43 }
 0x4f0   :  { %757 = vst [vmem:[#allocation8 + $0x18] sm:$0xff] %v2242_v42  ;;  %780 = vmatmul.f32.vlgmr.msrb.gmra.mxu2 %v2242_v42  ;;  %800 = vmatmul.f32.vlgmr.msra.gmra.mxu3 %v2242_v42 }
 0x4f1   :  { %1075 = vmatpush.msrb.mxu2 %v2111_v57  ;;  %1109 = vmatpush.msra.mxu3 %v2114_v62  ;;  %v2263_v62 = vld [vmem:[#allocation6 + $0x40] sm:$0xff] }
 0x4f3   :  { %1076 = vmatpush.msrb.mxu2 %v2117_v0  ;;  %1110 = vmatpush.msra.mxu3 %v2120_v4  ;;  %v2267_v4 = vld [vmem:[#allocation6 + $0x38] sm:$0xff] }
 0x4f5   :  { %1077 = vmatpush.msrb.mxu2 %v2123_v1  ;;  %1111 = vmatpush.msra.mxu3 %v2126_v2  ;;  %v2271_v2 = vld [vmem:[#allocation6 + $0x30] sm:$0xff] }
 0x4f7   :  { %1078 = vmatpush.msrb.mxu2 %v2129_v3  ;;  %1112 = vmatpush.msra.mxu3 %v2132_v5  ;;  %v2275_v5 = vld [vmem:[#allocation6 + $0x28] sm:$0xff] }
 0x4f9   :  { %1079 = vmatpush.msrb.mxu2 %v2135_v8  ;;  %1113 = vmatpush.msra.mxu3 %v2138_v9  ;;  %v2279_v9 = vld [vmem:[#allocation6 + $0x20] sm:$0xff] }
 0x4fb   :  { %1080 = vmatpush.msrb.mxu2 %v2141_v10  ;;  %1114 = vmatpush.msra.mxu3 %v2144_v11  ;;  %v2283_v11 = vld [vmem:[#allocation6 + $0x18] sm:$0xff] }
 0x4fd   :  { %1081 = vmatpush.msrb.mxu2 %v2259_v48  ;;  %1115 = vmatpush.msra.mxu3 %v2148_v12  ;;  %v2287_v12 = vld [vmem:[#allocation6 + $0x10] sm:$0xff] }
 0x4ff   :  { %1082 = vmatpush.msrb.mxu2 %v2263_v62  ;;  %1116 = vmatpush.msra.mxu3 %v2152_v13  ;;  %v2291_v13 = vld [vmem:[#allocation6 + $0x8] sm:$0xff] }
 0x501   :  { %1083 = vmatpush.msrb.mxu2 %v2267_v4  ;;  %1117 = vmatpush.msra.mxu3 %v2156_v14  ;;  %v2295_v14 = vld [vmem:[#allocation6] sm:$0xff] }
 0x503   :  { %1084 = vmatpush.msrb.mxu2 %v2271_v2  ;;  %1118 = vmatpush.msra.mxu3 %v2160_v15  ;;  %v2438_v15 = vld [vmem:[#allocation24_spill] sm:$0xff] }
 0x505   :  { %1085 = vmatpush.msrb.mxu2 %v2275_v5  ;;  %1119 = vmatpush.msra.mxu3 %v2164_v49  ;;  %v133_v49 = vadd.f32 %v2438_v15, %v1810_v60 }
 0x507   :  { %1086 = vmatpush.msrb.mxu2 %v2279_v9  ;;  %1120 = vmatpush.msra.mxu3 %v2168_v50 }
 0x509   :  { %1087 = vmatpush.msrb.mxu2 %v2283_v11  ;;  %1121 = vmatpush.msra.mxu3 %v2172_v51 }
 0x50b   :  { %1088 = vmatpush.msrb.mxu2 %v2287_v12  ;;  %1122 = vmatpush.msra.mxu3 %v2176_v54 }
 0x50d   :  { %1089 = vmatpush.msrb.mxu2 %v2291_v13  ;;  %1123 = vmatpush.msra.mxu3 %v2180_v56 }
 0x50f   :  { %1090 = vmatpush.msrb.mxu2 %v2295_v14  ;;  %1124 = vmatpush.msra.mxu3 %v2184_v58 }
 0x573   :  { %v781_v50 = vpop.f32.mrf.mxu2 }
 0x574   :  { %v804_v51 = vadd.f32 %v781_v50, %v133_v49 }
 0x576   :  { %v805_v23 = vsub.f32 0.0, %v804_v51  ;;  %v2442_v51 = vld [vmem:[#allocation37_spill] sm:$0xff] }
 0x578   :  { %v806_v61 = vmul.f32 1.442695, %v805_v23  ;;  %v177_v23 = vadd.f32 %v2442_v51, %v2426_v44 }
 0x57a   :  { %1320 = vpow2.f32 %v806_v61 }
 0x580   :  { %v1321_v54 = vpop.eup %1320 }
 0x581   :  { %v808_v16 = vadd.f32 1.0, %v1321_v54 }
 0x583   :  { %1322 = vrcp.f32 %v808_v16  ;;  %v820_v18 = vand.u32 2147483648, %v808_v16  ;;  %v818_v20 = vand.u32 2147483647, %v808_v16  ;;  %vm814_vm2 = vweird.f32 %v808_v16 }
 0x585   :  { %v821_v58 = vor.u32 1.1754944e-38, %v820_v18  ;;  %vm819_vm4 = vcmp.eq.f32.partialorder %v818_v20, 8.507059e+37 }
 0x589   :  { %v1323_v63 = vpop.eup %1322 }
 0x58a   :  { %v810_v17 = vmul.f32 %v1323_v63, %v808_v16  ;;  %vm815_vm1 = vweird.f32 %v1323_v63 }
 0x58b   :  { %vm816_vm3 = vmor %vm814_vm2, %vm815_vm1 }
 0x58c   :  { %v811_v56 = vsub.f32 1.0, %v810_v17 }
 0x58e   :  { %v812_v19 = vmul.f32 %v1323_v63, %v811_v56 }
 0x590   :  { %v813_v6 = vadd.f32 %v1323_v63, %v812_v19 }
 0x592   :  { %v817_v22 = vsel %vm816_vm3, %v1323_v63, %v813_v6 }
 0x593   :  { %v822_v24 = vsel %vm819_vm4, %v821_v58, %v817_v22 }
 0x594   :  { %v844_v25 = vmul.f32 %v822_v24, %v2242_v42 }
 0x596   :  { %861 = vmatmul.f32.vlgmr.msra.gmra.mxu0 %v844_v25  ;;  %v2443_v25 = vld [vmem:[#allocation32_spill] sm:$0xff] }
 0x597   :  { %1129 = vmatpush.msra.mxu0 %v2190_v36  ;;  %v801_v36 = vpop.f32.mrf.mxu3 }
 0x599   :  { %1130 = vmatpush.msra.mxu0 %v2193_v37  ;;  %v2439_v37 = vld [vmem:[#allocation36_spill] sm:$0xff] }
 0x59b   :  { %1131 = vmatpush.msra.mxu0 %v2196_v38  ;;  %v174_v38 = vadd.f32 %v2439_v37, %v2426_v44 }
 0x59d   :  { %1132 = vmatpush.msra.mxu0 %v2199_v39  ;;  %v824_v39 = vadd.f32 %v801_v36, %v174_v38 }
 0x59f   :  { %1133 = vmatpush.msra.mxu0 %v2202_v53  ;;  %v825_v53 = vsub.f32 0.0, %v824_v39 }
 0x5a1   :  { %1134 = vmatpush.msra.mxu0 %v2205_v59  ;;  %v826_v59 = vmul.f32 1.442695, %v825_v53 }
 0x5a3   :  { %1135 = vmatpush.msra.mxu0 %v2208_v45  ;;  %1324 = vpow2.f32 %v826_v59 }
 0x5a5   :  { %1136 = vmatpush.msra.mxu0 %v2211_v7 }
 0x5a7   :  { %1137 = vmatpush.msra.mxu0 %v2214_v41 }
 0x5a9   :  { %1138 = vmatpush.msra.mxu0 %v2217_v40  ;;  %v1325_v45 = vpop.eup %1324 }
 0x5aa   :  { %v828_v7 = vadd.f32 1.0, %v1325_v45 }
 0x5ab   :  { %1139 = vmatpush.msra.mxu0 %v2220_v32 }
 0x5ac   :  { %1326 = vrcp.f32 %v828_v7  ;;  %vm834_vm6 = vweird.f32 %v828_v7 }
 0x5ad   :  { %1140 = vmatpush.msra.mxu0 %v2223_v29 }
 0x5af   :  { %1141 = vmatpush.msra.mxu0 %v2226_v47 }
 0x5b1   :  { %1142 = vmatpush.msra.mxu0 %v2229_v21  ;;  %v840_v21 = vand.u32 2147483648, %v828_v7 }
 0x5b2   :  { %v1327_v41 = vpop.eup %1326 }
 0x5b3   :  { %1143 = vmatpush.msra.mxu0 %v2232_v55  ;;  %v830_v40 = vmul.f32 %v1327_v41, %v828_v7  ;;  %vm835_vm5 = vweird.f32 %v1327_v41  ;;  %v838_v55 = vand.u32 2147483647, %v828_v7  ;;  %v841_v30 = vor.u32 1.1754944e-38, %v840_v21 }
 0x5b4   :  { %vm836_vm7 = vmor %vm834_vm6, %vm835_vm5 }
 0x5b5   :  { %1144 = vmatpush.msra.mxu0 %v2235_v52  ;;  %v831_v32 = vsub.f32 1.0, %v830_v40  ;;  %vm839_vm8 = vcmp.eq.f32.partialorder %v838_v55, 8.507059e+37  ;;  %v2444_v40 = vld [vmem:[#allocation28_spill] sm:$0xff] }
 0x5b7   :  { %v832_v29 = vmul.f32 %v1327_v41, %v831_v32  ;;  %v139_v32 = vadd.f32 %v2444_v40, %v1810_v60 }
 0x5b9   :  { %v833_v47 = vadd.f32 %v1327_v41, %v832_v29 }
 0x5bb   :  { %v837_v28 = vsel %vm836_vm7, %v1327_v41, %v833_v47 }
 0x5bc   :  { %v842_v31 = vsel %vm839_vm8, %v841_v30, %v837_v28 }
 0x5bd   :  { %v868_v33 = vsub.f32 1.0, %v842_v31  ;;  %v867_v35 = vmul.f32 %v842_v31, %v2242_v42 }
 0x613   :  { %v862_v52 = vpop.f32.mrf.mxu0 }
 0x614   :  { %v865_v27 = vadd.f32 %v862_v52, %v2440_v26 }
 0x616   :  { %1328 = vtanh.f32 %v865_v27 }
 0x61c   :  { %v1329_v34 = vpop.eup %1328 }
 0x61d   :  { %v869_v43 = vmul.f32 %v1329_v34, %v868_v33 }
 0x61f   :  { %v2322_v46 = vadd.f32 %v869_v43, %v867_v35 }
 0x621   :  { %872 = vst [vmem:[#allocation8 + $0x20] sm:$0xff] %v2322_v46  ;;  %895 = vmatmul.f32.vlgmr.msra.gmra.mxu1 %v2322_v46  ;;  %915 = vmatmul.f32.vlgmr.msra.gmra.mxu2 %v2322_v46 }
 0x622   :  { %1190 = vmatpush.msra.mxu1 %v2111_v57  ;;  %v2441_v57 = vld [vmem:[#allocation25_spill] sm:$0xff] }
 0x624   :  { %1191 = vmatpush.msra.mxu1 %v2117_v0  ;;  %v136_v0 = vadd.f32 %v2441_v57, %v1810_v60 }
 0x626   :  { %1192 = vmatpush.msra.mxu1 %v2123_v1 }
 0x628   :  { %1193 = vmatpush.msra.mxu1 %v2129_v3 }
 0x62a   :  { %1194 = vmatpush.msra.mxu1 %v2135_v8 }
 0x62c   :  { %1195 = vmatpush.msra.mxu1 %v2141_v10 }
 0x62e   :  { %1196 = vmatpush.msra.mxu1 %v2259_v48 }
 0x630   :  { %1197 = vmatpush.msra.mxu1 %v2263_v62 }
 0x632   :  { %1198 = vmatpush.msra.mxu1 %v2267_v4 }
 0x634   :  { %1199 = vmatpush.msra.mxu1 %v2271_v2 }
 0x636   :  { %1200 = vmatpush.msra.mxu1 %v2275_v5 }
 0x638   :  { %1201 = vmatpush.msra.mxu1 %v2279_v9 }
 0x63a   :  { %1202 = vmatpush.msra.mxu1 %v2283_v11 }
 0x63c   :  { %1203 = vmatpush.msra.mxu1 %v2287_v12 }
 0x63e   :  { %1204 = vmatpush.msra.mxu1 %v2291_v13 }
 0x640   :  { %1205 = vmatpush.msra.mxu1 %v2295_v14 }
 0x69e   :  { %v896_v1 = vpop.f32.mrf.mxu1 }
 0x69f   :  { %v919_v3 = vadd.f32 %v896_v1, %v136_v0 }
 0x6a1   :  { %v920_v8 = vsub.f32 0.0, %v919_v3  ;;  %v2445_v3 = vld [vmem:[#allocation38_spill] sm:$0xff] }
 0x6a3   :  { %v921_v10 = vmul.f32 1.442695, %v920_v8  ;;  %v180_v8 = vadd.f32 %v2445_v3, %v2426_v44 }
 0x6a4   :  { %v916_v50 = vpop.f32.mrf.mxu2 }
 0x6a5   :  { %1330 = vpow2.f32 %v921_v10  ;;  %v939_v61 = vadd.f32 %v916_v50, %v177_v23 }
 0x6a7   :  { %v940_v54 = vsub.f32 0.0, %v939_v61 }
 0x6a9   :  { %v941_v16 = vmul.f32 1.442695, %v940_v54 }
 0x6ab   :  { %v1331_v42 = vpop.eup %1330 }
 0x6ac   :  { %v923_v48 = vadd.f32 1.0, %v1331_v42 }
 0x6ae   :  { %1332 = vrcp.f32 %v923_v48  ;;  %v935_v5 = vand.u32 2147483648, %v923_v48  ;;  %v933_v11 = vand.u32 2147483647, %v923_v48  ;;  %vm929_vm10 = vweird.f32 %v923_v48 }
 0x6af   :  { %1334 = vpow2.f32 %v941_v16 }
 0x6b0   :  { %v936_v13 = vor.u32 1.1754944e-38, %v935_v5  ;;  %vm934_vm12 = vcmp.eq.f32.partialorder %v933_v11, 8.507059e+37 }
 0x6b4   :  { %v1333_v62 = vpop.eup %1332 }
 0x6b5   :  { %v925_v4 = vmul.f32 %v1333_v62, %v923_v48  ;;  %vm930_vm9 = vweird.f32 %v1333_v62  ;;  %v1335_v63 = vpop.eup %1334 }
 0x6b6   :  { %vm931_vm11 = vmor %vm929_vm10, %vm930_vm9  ;;  %v943_v17 = vadd.f32 1.0, %v1335_v63 }
 0x6b7   :  { %v926_v2 = vsub.f32 1.0, %v925_v4 }
 0x6b8   :  { %1336 = vrcp.f32 %v943_v17  ;;  %v955_v58 = vand.u32 2147483648, %v943_v17  ;;  %vm949_vm14 = vweird.f32 %v943_v17  ;;  %v953_v22 = vand.u32 2147483647, %v943_v17 }
 0x6b9   :  { %v927_v9 = vmul.f32 %v1333_v62, %v926_v2 }
 0x6ba   :  { %v956_v38 = vor.u32 1.1754944e-38, %v955_v58  ;;  %vm954_vm0 = vcmp.eq.f32.partialorder %v953_v22, 8.507059e+37 }
 0x6bb   :  { %v928_v12 = vadd.f32 %v1333_v62, %v927_v9 }
 0x6bd   :  { %v932_v14 = vsel %vm931_vm11, %v1333_v62, %v928_v12 }
 0x6be   :  { %v937_v15 = vsel %vm934_vm12, %v936_v13, %v932_v14  ;;  %v1337_v56 = vpop.eup %1336 }
 0x6bf   :  { %v959_v49 = vmul.f32 %v937_v15, %v2322_v46  ;;  %v945_v18 = vmul.f32 %v1337_v56, %v943_v17  ;;  %vm950_vm13 = vweird.f32 %v1337_v56 }
 0x6c0   :  { %vm951_vm15 = vmor %vm949_vm14, %vm950_vm13 }
 0x6c1   :  { %976 = vmatmul.f32.vlgmr.msrb.gmra.mxu3 %v959_v49  ;;  %v946_v19 = vsub.f32 1.0, %v945_v18  ;;  %v2446_v49 = vld [vmem:[#allocation33_spill] sm:$0xff] }
 0x6c2   :  { %v2447_v18 = vld [vmem:[#allocation21_spill] sm:$0xff] }
 0x6c3   :  { %v947_v20 = vmul.f32 %v1337_v56, %v946_v19  ;;  %v142_v19 = vadd.f32 %v2447_v18, %v1810_v60 }
 0x6c5   :  { %v948_v6 = vadd.f32 %v1337_v56, %v947_v20 }
 0x6c7   :  { %v952_v37 = vsel %vm951_vm15, %v1337_v56, %v948_v6 }
 0x6c8   :  { %v957_v39 = vsel %vm954_vm0, %v956_v38, %v952_v37 }
 0x6c9   :  { %v983_v53 = vsub.f32 1.0, %v957_v39  ;;  %v982_v45 = vmul.f32 %v957_v39, %v2322_v46 }
 0x744   :  { %v977_v24 = vpop.f32.mrf.mxu3 }
 0x745   :  { %v980_v36 = vadd.f32 %v977_v24, %v2443_v25 }
 0x747   :  { %1338 = vtanh.f32 %v980_v36 }
 0x74d   :  { %v1339_v59 = vpop.eup %1338 }
 0x74e   :  { %v984_v7 = vmul.f32 %v1339_v59, %v983_v53 }
 0x750   :  { %v985_v41 = vadd.f32 %v984_v7, %v982_v45 }
 0x752   :  { %987 = vst [vmem:[#allocation8 + $0x28] sm:$0xff] %v985_v41  ;;  %1010 = vmatmul.f32.vlgmr.msrb.gmra.mxu0 %v985_v41  ;;  %1030 = vmatmul.f32.vlgmr.msrb.gmra.mxu1 %v985_v41 }
 0x7cf   :  { %v1011_v29 = vpop.f32.mrf.mxu0  ;;  %v1031_v1 = vpop.f32.mrf.mxu1 }
 0x7d0   :  { %v1034_v47 = vadd.f32 %v1011_v29, %v139_v32  ;;  %v1054_v10 = vadd.f32 %v1031_v1, %v180_v8  ;;  %v2448_v29 = vld [vmem:[#allocation23_spill] sm:$0xff] }
 0x7d2   :  { %v1035_v21 = vsub.f32 0.0, %v1034_v47  ;;  %v1055_v42 = vsub.f32 0.0, %v1054_v10  ;;  %v183_v47 = vadd.f32 %v2448_v29, %v2426_v44 }
 0x7d4   :  { %v1036_v55 = vmul.f32 1.442695, %v1035_v21  ;;  %v1056_v48 = vmul.f32 1.442695, %v1055_v42 }
 0x7d6   :  { %1340 = vpow2.f32 %v1036_v55 }
 0x7dc   :  { %v1341_v52 = vpop.eup %1340 }
 0x7dd   :  { %v1038_v26 = vadd.f32 1.0, %v1341_v52 }
 0x7df   :  { %1342 = vrcp.f32 %v1038_v26  ;;  %v1050_v31 = vand.u32 2147483648, %v1038_v26  ;;  %v1048_v34 = vand.u32 2147483647, %v1038_v26  ;;  %vm1044_vm2 = vweird.f32 %v1038_v26 }
 0x7e0   :  { %1344 = vpow2.f32 %v1056_v48 }
 0x7e1   :  { %v1051_v43 = vor.u32 1.1754944e-38, %v1050_v31  ;;  %vm1049_vm4 = vcmp.eq.f32.partialorder %v1048_v34, 8.507059e+37 }
 0x7e5   :  { %v1343_v27 = vpop.eup %1342 }
 0x7e6   :  { %v1040_v28 = vmul.f32 %v1343_v27, %v1038_v26  ;;  %vm1045_vm1 = vweird.f32 %v1343_v27  ;;  %v1345_v62 = vpop.eup %1344 }
 0x7e7   :  { %vm1046_vm3 = vmor %vm1044_vm2, %vm1045_vm1  ;;  %v1058_v4 = vadd.f32 1.0, %v1345_v62 }
 0x7e8   :  { %v1041_v30 = vsub.f32 1.0, %v1040_v28 }
 0x7e9   :  { %1346 = vrcp.f32 %v1058_v4  ;;  %v1070_v13 = vand.u32 2147483648, %v1058_v4  ;;  %vm1064_vm6 = vweird.f32 %v1058_v4  ;;  %v1068_v14 = vand.u32 2147483647, %v1058_v4 }
 0x7ea   :  { %v1042_v33 = vmul.f32 %v1343_v27, %v1041_v30 }
 0x7eb   :  { %v1071_v23 = vor.u32 1.1754944e-38, %v1070_v13  ;;  %vm1069_vm8 = vcmp.eq.f32.partialorder %v1068_v14, 8.507059e+37 }
 0x7ec   :  { %v1043_v35 = vadd.f32 %v1343_v27, %v1042_v33 }
 0x7ee   :  { %v1047_v46 = vsel %vm1046_vm3, %v1343_v27, %v1043_v35  ;;  %v2449_v35 = vld [vmem:[#allocation26_spill] sm:$0xff] }
 0x7ef   :  { %v1052_v57 = vsel %vm1049_vm4, %v1051_v43, %v1047_v46  ;;  %v1347_v2 = vpop.eup %1346  ;;  %v2450_v43 = vld [vmem:[#allocation12_spill] sm:$0xff] }
 0x7f0   :  { %v1074_v0 = vmul.f32 %v1052_v57, %v985_v41  ;;  %v1060_v5 = vmul.f32 %v1347_v2, %v1058_v4  ;;  %vm1065_vm5 = vweird.f32 %v1347_v2  ;;  %v224_v46 = vadd.f32 %v2450_v43, %v2449_v35 }
 0x7f1   :  { %vm1066_vm7 = vmor %vm1064_vm6, %vm1065_vm5 }
 0x7f2   :  { %1091 = vmatmul.f32.vlgmr.msrb.gmra.mxu2 %v1074_v0  ;;  %v1061_v9 = vsub.f32 1.0, %v1060_v5 }
 0x7f4   :  { %v1062_v11 = vmul.f32 %v1347_v2, %v1061_v9 }
 0x7f6   :  { %v1063_v12 = vadd.f32 %v1347_v2, %v1062_v11 }
 0x7f8   :  { %v1067_v51 = vsel %vm1066_vm7, %v1347_v2, %v1063_v12 }
 0x7f9   :  { %v1072_v61 = vsel %vm1069_vm8, %v1071_v23, %v1067_v51 }
 0x7fa   :  { %v1098_v54 = vsub.f32 1.0, %v1072_v61  ;;  %v1097_v63 = vmul.f32 %v1072_v61, %v985_v41 }
 0x875   :  { %v1092_v15 = vpop.f32.mrf.mxu2 }
 0x876   :  { %v1095_v50 = vadd.f32 %v1092_v15, %v2446_v49 }
 0x878   :  { %1348 = vtanh.f32 %v1095_v50 }
 0x87e   :  { %v1349_v16 = vpop.eup %1348 }
 0x87f   :  { %v1099_v17 = vmul.f32 %v1349_v16, %v1098_v54 }
 0x881   :  { %v1100_v56 = vadd.f32 %v1099_v17, %v1097_v63 }
 0x883   :  { %1102 = vst [vmem:[#allocation8 + $0x30] sm:$0xff] %v1100_v56  ;;  %1125 = vmatmul.f32.vlgmr.msra.gmra.mxu3 %v1100_v56  ;;  %1145 = vmatmul.f32.vlgmr.msra.gmra.mxu0 %v1100_v56 }
 0x900   :  { %v1146_v32 = vpop.f32.mrf.mxu0 }
 0x901   :  { %v1169_v21 = vadd.f32 %v1146_v32, %v183_v47 }
 0x903   :  { %v1170_v55 = vsub.f32 0.0, %v1169_v21 }
 0x905   :  { %v1171_v52 = vmul.f32 1.442695, %v1170_v55 }
 0x906   :  { %v1126_v20 = vpop.f32.mrf.mxu3 }
 0x907   :  { %v1149_v6 = vadd.f32 %v1126_v20, %v142_v19 }
 0x909   :  { %v1150_v58 = vsub.f32 0.0, %v1149_v6 }
 0x90b   :  { %v1151_v22 = vmul.f32 1.442695, %v1150_v58 }
 0x90d   :  { %1350 = vpow2.f32 %v1151_v22 }
 0x913   :  { %v1351_v24 = vpop.eup %1350 }
 0x914   :  { %v1153_v25 = vadd.f32 1.0, %v1351_v24 }
 0x916   :  { %1352 = vrcp.f32 %v1153_v25  ;;  %v1165_v39 = vand.u32 2147483648, %v1153_v25  ;;  %v1163_v59 = vand.u32 2147483647, %v1153_v25  ;;  %vm1159_vm10 = vweird.f32 %v1153_v25 }
 0x917   :  { %1354 = vpow2.f32 %v1171_v52 }
 0x918   :  { %v1166_v7 = vor.u32 1.1754944e-38, %v1165_v39  ;;  %vm1164_vm12 = vcmp.eq.f32.partialorder %v1163_v59, 8.507059e+37 }
 0x91c   :  { %v1353_v36 = vpop.eup %1352 }
 0x91d   :  { %v1155_v37 = vmul.f32 %v1353_v36, %v1153_v25  ;;  %vm1160_vm9 = vweird.f32 %v1353_v36  ;;  %v1355_v26 = vpop.eup %1354 }
 0x91e   :  { %vm1161_vm11 = vmor %vm1159_vm10, %vm1160_vm9  ;;  %v1173_v27 = vadd.f32 1.0, %v1355_v26 }
 0x91f   :  { %v1156_v38 = vsub.f32 1.0, %v1155_v37 }
 0x920   :  { %1356 = vrcp.f32 %v1173_v27  ;;  %v1185_v57 = vand.u32 2147483648, %v1173_v27  ;;  %vm1179_vm14 = vweird.f32 %v1173_v27  ;;  %v1183_v0 = vand.u32 2147483647, %v1173_v27 }
 0x921   :  { %v1157_v53 = vmul.f32 %v1353_v36, %v1156_v38 }
 0x922   :  { %v1186_v8 = vor.u32 1.1754944e-38, %v1185_v57  ;;  %vm1184_vm0 = vcmp.eq.f32.partialorder %v1183_v0, 8.507059e+37 }
 0x923   :  { %v1158_v45 = vadd.f32 %v1353_v36, %v1157_v53 }
 0x925   :  { %v1162_v60 = vsel %vm1161_vm11, %v1353_v36, %v1158_v45 }
 0x926   :  { %v1167_v41 = vsel %vm1164_vm12, %v1166_v7, %v1162_v60  ;;  %v1357_v28 = vpop.eup %1356 }
 0x927   :  { %v1189_v40 = vmul.f32 %v1167_v41, %v1100_v56  ;;  %v1175_v30 = vmul.f32 %v1357_v28, %v1173_v27  ;;  %vm1180_vm13 = vweird.f32 %v1357_v28 }
 0x928   :  { %vm1181_vm15 = vmor %vm1179_vm14, %vm1180_vm13 }
 0x929   :  { %1206 = vmatmul.f32.vlgmr.msra.gmra.mxu1 %v1189_v40  ;;  %v1176_v31 = vsub.f32 1.0, %v1175_v30 }
 0x92b   :  { %v1177_v33 = vmul.f32 %v1357_v28, %v1176_v31 }
 0x92d   :  { %v1178_v34 = vadd.f32 %v1357_v28, %v1177_v33 }
 0x92f   :  { %v1182_v3 = vsel %vm1181_vm15, %v1357_v28, %v1178_v34 }
 0x930   :  { %v1187_v10 = vsel %vm1184_vm0, %v1186_v8, %v1182_v3 }
 0x931   :  { %v1213_v42 = vsub.f32 1.0, %v1187_v10  ;;  %v1212_v62 = vmul.f32 %v1187_v10, %v1100_v56 }
 0x9a6   :  { %v1207_v44 = vpop.f32.mrf.mxu1 }
 0x9a7   :  { %v1210_v1 = vadd.f32 %v1207_v44, %v224_v46 }
 0x9a9   :  { %1358 = vtanh.f32 %v1210_v1 }
 0x9af   :  { %v1359_v48 = vpop.eup %1358 }
 0x9b0   :  { %v1214_v4 = vmul.f32 %v1359_v48, %v1213_v42 }
 0x9b2   :  { %v1215_v2 = vadd.f32 %v1214_v4, %v1212_v62 }
 0x9b4   :  { %1217 = vst [vmem:[#allocation8 + $0x38] sm:$0xff] %v1215_v2 }
 0x9b5   :  { %1230 = dma.vmem_to_hbm [thread:$0]  %s1223_s3, 1024, %s1225_s17, [#allocation5], %s1490_s9, %s1490_s9, %s1491_s10  }
 0x9b6   :  { %1484 = dma.done.wait [#allocation5], 1024  }
 0x9b7   :  { %1485 = vsyncadd [#allocation5], 4294966272 }
 0x9b8   :  { %1235 = vsyncpa [#allocation4], 1 }
 0x9b9   :  { %1236 = vsyncpa [#allocation7], 1 }
 0x9ba   :  { %1237 = vsyncpa [#allocation5], 1 }

</bundles_post_ra>
